<compile_context>
chip_gen: v7x
topology: tpu7x:2x2x1
jax: 0.10.0
libtpu: 0.0.40
codegen_flags: <defaults>
</compile_context>

<pallas_src>
import functools

import jax
import jax.numpy as jnp
from jax.experimental import pallas as pl
from jax.experimental.pallas import tpu as pltpu


def _round_up(x, m):
    return ((x + m - 1) // m) * m


# ----------------------------------------------------------------------------
# Kernel 1: fused Conv3x3(same) + bias + ReLU + global average pool (per image)
# ----------------------------------------------------------------------------
def _conv_relu_gap_kernel(x_ref, w_ref, b_ref, o_ref, *, H, W, Cin, row_chunk):
    # x_ref: (H+2, W+2, Cin)   bf16  zero-padded image (batch dim squeezed)
    # w_ref: (9, Cin, CMID_PAD) bf16 tap-major conv weights, out-ch padded to 128
    # b_ref: (1, CMID_PAD)     f32   conv bias (padded lanes are 0)
    # o_ref: (1, CMID_PAD)     bf16  pooled features (lane-dense, 128 wide)
    cpad = o_ref.shape[-1]
    # One HBM->VMEM DMA of the bf16 image; upcast once so the shifted
    # slices / reshapes below run on the robust f32 layout path.
    x = x_ref[...].astype(jnp.float32)
    bias = b_ref[...]                                     # (1, cpad) f32
    pooled = jnp.zeros((1, cpad), jnp.float32)

    n_chunks = H // row_chunk
    for c in range(n_chunks):                             # bounded VMEM working set
        r0 = c * row_chunk
        acc = jnp.zeros((row_chunk * W, cpad), jnp.float32)
        for dy in range(3):                               # weight-stationary 3x3 taps
            for dx in range(3):
                sl = x[r0 + dy:r0 + dy + row_chunk, dx:dx + W, :]   # (rc, W, Cin)
                lhs = sl.reshape(row_chunk * W, Cin).astype(jnp.bfloat16)
                acc = acc + jnp.dot(lhs, w_ref[dy * 3 + dx],
                                    preferred_element_type=jnp.float32)
        acc = jnp.maximum(acc + bias, 0.0)                # bias + ReLU (f32 epilogue)
        pooled = pooled + jnp.sum(acc, axis=0, keepdims=True)

    o_ref[...] = (pooled * (1.0 / float(H * W))).astype(o_ref.dtype)


def conv_relu_gap(x_pad, w_taps, conv_b, *, H, W):
    """x_pad: (B, H+2, W+2, Cin) bf16 -> pooled features (B, CMID_PAD) bf16."""
    B, Hp, Wp, Cin = x_pad.shape
    cpad = w_taps.shape[-1]
    row_chunk = 8 if H % 8 == 0 else H
    kernel = functools.partial(_conv_relu_gap_kernel,
                               H=H, W=W, Cin=Cin, row_chunk=row_chunk)
    out = pl.pallas_call(
        kernel,
        out_shape=jax.ShapeDtypeStruct((B, 1, cpad), jnp.bfloat16),
        grid=(B,),
        in_specs=[
            pl.BlockSpec((None, Hp, Wp, Cin), lambda b: (b, 0, 0, 0)),
            pl.BlockSpec((9, Cin, cpad), lambda b: (0, 0, 0)),
            pl.BlockSpec((1, cpad), lambda b: (0, 0)),
        ],
        out_specs=pl.BlockSpec((None, 1, cpad), lambda b: (b, 0, 0)),
        compiler_params=pltpu.CompilerParams(
            dimension_semantics=("parallel",)),
    )(x_pad, w_taps, conv_b)
    return out.reshape(B, cpad)


# ----------------------------------------------------------------------------
# Kernel 2: fused backbone-head + output_layer + sigmoid
#   feat = pooled @ W1 + b1        (16->512, stays in VMEM/registers)
#   out  = sigmoid(feat @ W2 + b2) (512->num_classes, padded to 128 lanes)
# ----------------------------------------------------------------------------
def _head_kernel(p_ref, w1_ref, b1_ref, w2_ref, b2_ref, o_ref):
    feat = jnp.dot(p_ref[...], w1_ref[...], preferred_element_type=jnp.float32)
    feat = feat + b1_ref[...]
    logits = jnp.dot(feat.astype(w2_ref.dtype), w2_ref[...],
                     preferred_element_type=jnp.float32)
    logits = logits + b2_ref[...]
    o_ref[...] = jax.nn.sigmoid(logits).astype(o_ref.dtype)


def fused_head(pooled, w1, b1, w2, b2):
    B, cpad = pooled.shape
    fpad = w1.shape[1]
    ncp = w2.shape[1]
    return pl.pallas_call(
        _head_kernel,
        out_shape=jax.ShapeDtypeStruct((B, ncp), jnp.float32),
        grid=(1,),
        in_specs=[
            pl.BlockSpec((B, cpad), lambda i: (0, 0)),
            pl.BlockSpec((cpad, fpad), lambda i: (0, 0)),
            pl.BlockSpec((1, fpad), lambda i: (0, 0)),
            pl.BlockSpec((fpad, ncp), lambda i: (0, 0)),
            pl.BlockSpec((1, ncp), lambda i: (0, 0)),
        ],
        out_specs=pl.BlockSpec((B, ncp), lambda i: (0, 0)),
    )(pooled, w1, b1, w2, b2)


# ----------------------------------------------------------------------------
# Forward pass (mirrors timm_models.forward)
# ----------------------------------------------------------------------------
@jax.jit
def forward(img_nchw, params):
    # --- backbone (stand-in for timm.create_model(..., num_classes=512)) ---
    x = jnp.transpose(img_nchw, (0, 2, 3, 1)).astype(jnp.bfloat16)   # NCHW -> NHWC bf16
    B, H, W, Cin = x.shape
    x_pad = jnp.pad(x, ((0, 0), (1, 1), (1, 1), (0, 0)))             # same-pad for 3x3

    cmid = params["conv_w"].shape[0]
    cpad = _round_up(cmid, 128)
    # PyTorch conv weight (O, I, KH, KW) -> (KH, KW, I, O) -> (9, I, O_pad)
    w_taps = jnp.transpose(params["conv_w"], (2, 3, 1, 0)).reshape(9, Cin, cmid)
    w_taps = jnp.pad(w_taps, ((0, 0), (0, 0), (0, cpad - cmid))).astype(jnp.bfloat16)
    conv_b = jnp.pad(params["conv_b"], (0, cpad - cmid)).reshape(1, cpad)
    conv_b = conv_b.astype(jnp.float32)

    pooled = conv_relu_gap(x_pad, w_taps, conv_b, H=H, W=W)          # (B, 128) bf16

    # --- fused head: Linear(16->512) then output_layer(512->nc) + sigmoid ---
    feat_dim = params["fc_w"].shape[0]
    fpad = _round_up(feat_dim, 128)
    nc = params["out_w"].shape[0]
    ncp = _round_up(nc, 128)

    w1 = jnp.pad(params["fc_w"].T,
                 ((0, cpad - cmid), (0, fpad - feat_dim))).astype(jnp.bfloat16)
    b1 = jnp.pad(params["fc_b"], (0, fpad - feat_dim)).reshape(1, fpad)
    b1 = b1.astype(jnp.float32)
    w2 = jnp.pad(params["out_w"].T,
                 ((0, fpad - feat_dim), (0, ncp - nc))).astype(jnp.bfloat16)
    b2 = jnp.pad(params["out_b"], (0, ncp - nc)).reshape(1, ncp).astype(jnp.float32)

    out_padded = fused_head(pooled, w1, b1, w2, b2)                  # (B, 128) f32
    return out_padded[:, :nc]                                        # (B, num_classes)


# ----------------------------------------------------------------------------
# Deterministic parameter init + smoke test
# ----------------------------------------------------------------------------
if __name__ == "__main__":
    num_classes = 10
    cmid = 16        # backbone conv channels
    feat_dim = 512   # timm head output dim (fixed by num_classes=512 in __init__)

    key = jax.random.PRNGKey(0)
    ks = jax.random.split(key, 7)
    params = {
        "conv_w": jax.random.normal(ks[0], (cmid, 3, 3, 3), jnp.float32) * 0.1,
        "conv_b": jax.random.normal(ks[1], (cmid,), jnp.float32) * 0.1,
        "fc_w":   jax.random.normal(ks[2], (feat_dim, cmid), jnp.float32) * 0.1,
        "fc_b":   jax.random.normal(ks[3], (feat_dim,), jnp.float32) * 0.1,
        "out_w":  jax.random.normal(ks[4], (num_classes, feat_dim), jnp.float32) * 0.05,
        "out_b":  jax.random.normal(ks[5], (num_classes,), jnp.float32) * 0.05,
    }

    img = jax.random.normal(ks[6], (2, 3, 16, 16), jnp.float32)  # NCHW, like PyTorch

    out = jax.block_until_ready(forward(img, params))

    assert out.shape == (2, num_classes), out.shape
    assert bool(jnp.all((out >= 0.0) & (out <= 1.0))), "sigmoid output out of range"
    print("KERNEL_OK")
</pallas_src>

<mosaic_0001>
module attributes {stable_mosaic.version = 11 : i64} {
  func.func @_conv_relu_gap_kernel(%arg0: i32, %arg1: memref<1x18x18x3xbf16, #tpu.memory_space<vmem>>, %arg2: memref<9x3x128xbf16, #tpu.memory_space<vmem>>, %arg3: memref<1x128xf32, #tpu.memory_space<vmem>>, %arg4: memref<1x1x128xbf16, #tpu.memory_space<vmem>>) attributes {dimension_semantics = [#tpu.dimension_semantics<parallel>], iteration_bounds = array<i64: 2>, scalar_prefetch = 0 : i64, scratch_operands = 0 : i64, tpu.core_type = #tpu.core_type<tc>, window_params = [{transform_indices = @transform_0, window_bounds = array<i64: 1, 18, 18, 3>}, {pipeline_mode = #tpu.pipeline_mode<synchronous>, transform_indices = @transform_1, window_bounds = array<i64: 9, 3, 128>}, {pipeline_mode = #tpu.pipeline_mode<synchronous>, transform_indices = @transform_2, window_bounds = array<i64: 1, 128>}, {transform_indices = @transform_3, window_bounds = array<i64: 1, 1, 128>}]} {
    %c0 = arith.constant 0 : index
    %c0_0 = arith.constant 0 : index
    %c0_1 = arith.constant 0 : index
    %c0_2 = arith.constant 0 : index
    %0 = vector.load %arg1[%c0, %c0_0, %c0_1, %c0_2] : memref<1x18x18x3xbf16, #tpu.memory_space<vmem>>, vector<1x18x18x3xbf16>
    %1 = vector.shape_cast %0 : vector<1x18x18x3xbf16> to vector<18x18x3xbf16>
    %2 = arith.extf %1 : vector<18x18x3xbf16> to vector<18x18x3xf32>
    %c0_3 = arith.constant 0 : index
    %c0_4 = arith.constant 0 : index
    %3 = vector.load %arg3[%c0_3, %c0_4] : memref<1x128xf32, #tpu.memory_space<vmem>>, vector<1x128xf32>
    %cst = arith.constant 0.000000e+00 : f32
    %4 = vector.broadcast %cst : f32 to vector<1x128xf32>
    %cst_5 = arith.constant 0.000000e+00 : f32
    %5 = vector.broadcast %cst_5 : f32 to vector<128x128xf32>
    %6 = vector.extract_strided_slice %2 {offsets = [0, 0, 0], sizes = [8, 16, 3], strides = [1, 1, 1]} : vector<18x18x3xf32> to vector<8x16x3xf32>
    %7 = vector.shape_cast %6 : vector<8x16x3xf32> to vector<128x3xf32>
    %8 = arith.truncf %7 : vector<128x3xf32> to vector<128x3xbf16>
    %c0_6 = arith.constant 0 : index
    %c0_7 = arith.constant 0 : index
    %c0_8 = arith.constant 0 : index
    %9 = vector.load %arg2[%c0_6, %c0_7, %c0_8] : memref<9x3x128xbf16, #tpu.memory_space<vmem>>, vector<1x3x128xbf16>
    %10 = vector.shape_cast %9 : vector<1x3x128xbf16> to vector<3x128xbf16>
    %cst_9 = arith.constant dense<0.000000e+00> : vector<128x128xf32>
    %11 = tpu.matmul %8, %10, %cst_9 {dimension_numbers = #tpu.dot_dimension_numbers<[1], [0], [0], [1], [0, 0, 1, 1], [], []>} : vector<128x3xbf16>, vector<3x128xbf16>, vector<128x128xf32> -> vector<128x128xf32>
    %12 = arith.addf %5, %11 : vector<128x128xf32>
    %13 = vector.extract_strided_slice %2 {offsets = [0, 1, 0], sizes = [8, 16, 3], strides = [1, 1, 1]} : vector<18x18x3xf32> to vector<8x16x3xf32>
    %14 = vector.shape_cast %13 : vector<8x16x3xf32> to vector<128x3xf32>
    %15 = arith.truncf %14 : vector<128x3xf32> to vector<128x3xbf16>
    %c1 = arith.constant 1 : index
    %c0_10 = arith.constant 0 : index
    %c0_11 = arith.constant 0 : index
    %16 = vector.load %arg2[%c1, %c0_10, %c0_11] : memref<9x3x128xbf16, #tpu.memory_space<vmem>>, vector<1x3x128xbf16>
    %17 = vector.shape_cast %16 : vector<1x3x128xbf16> to vector<3x128xbf16>
    %cst_12 = arith.constant dense<0.000000e+00> : vector<128x128xf32>
    %18 = tpu.matmul %15, %17, %cst_12 {dimension_numbers = #tpu.dot_dimension_numbers<[1], [0], [0], [1], [0, 0, 1, 1], [], []>} : vector<128x3xbf16>, vector<3x128xbf16>, vector<128x128xf32> -> vector<128x128xf32>
    %19 = arith.addf %12, %18 : vector<128x128xf32>
    %20 = vector.extract_strided_slice %2 {offsets = [0, 2, 0], sizes = [8, 16, 3], strides = [1, 1, 1]} : vector<18x18x3xf32> to vector<8x16x3xf32>
    %21 = vector.shape_cast %20 : vector<8x16x3xf32> to vector<128x3xf32>
    %22 = arith.truncf %21 : vector<128x3xf32> to vector<128x3xbf16>
    %c2 = arith.constant 2 : index
    %c0_13 = arith.constant 0 : index
    %c0_14 = arith.constant 0 : index
    %23 = vector.load %arg2[%c2, %c0_13, %c0_14] : memref<9x3x128xbf16, #tpu.memory_space<vmem>>, vector<1x3x128xbf16>
    %24 = vector.shape_cast %23 : vector<1x3x128xbf16> to vector<3x128xbf16>
    %cst_15 = arith.constant dense<0.000000e+00> : vector<128x128xf32>
    %25 = tpu.matmul %22, %24, %cst_15 {dimension_numbers = #tpu.dot_dimension_numbers<[1], [0], [0], [1], [0, 0, 1, 1], [], []>} : vector<128x3xbf16>, vector<3x128xbf16>, vector<128x128xf32> -> vector<128x128xf32>
    %26 = arith.addf %19, %25 : vector<128x128xf32>
    %27 = vector.extract_strided_slice %2 {offsets = [1, 0, 0], sizes = [8, 16, 3], strides = [1, 1, 1]} : vector<18x18x3xf32> to vector<8x16x3xf32>
    %28 = vector.shape_cast %27 : vector<8x16x3xf32> to vector<128x3xf32>
    %29 = arith.truncf %28 : vector<128x3xf32> to vector<128x3xbf16>
    %c3 = arith.constant 3 : index
    %c0_16 = arith.constant 0 : index
    %c0_17 = arith.constant 0 : index
    %30 = vector.load %arg2[%c3, %c0_16, %c0_17] : memref<9x3x128xbf16, #tpu.memory_space<vmem>>, vector<1x3x128xbf16>
    %31 = vector.shape_cast %30 : vector<1x3x128xbf16> to vector<3x128xbf16>
    %cst_18 = arith.constant dense<0.000000e+00> : vector<128x128xf32>
    %32 = tpu.matmul %29, %31, %cst_18 {dimension_numbers = #tpu.dot_dimension_numbers<[1], [0], [0], [1], [0, 0, 1, 1], [], []>} : vector<128x3xbf16>, vector<3x128xbf16>, vector<128x128xf32> -> vector<128x128xf32>
    %33 = arith.addf %26, %32 : vector<128x128xf32>
    %34 = vector.extract_strided_slice %2 {offsets = [1, 1, 0], sizes = [8, 16, 3], strides = [1, 1, 1]} : vector<18x18x3xf32> to vector<8x16x3xf32>
    %35 = vector.shape_cast %34 : vector<8x16x3xf32> to vector<128x3xf32>
    %36 = arith.truncf %35 : vector<128x3xf32> to vector<128x3xbf16>
    %c4 = arith.constant 4 : index
    %c0_19 = arith.constant 0 : index
    %c0_20 = arith.constant 0 : index
    %37 = vector.load %arg2[%c4, %c0_19, %c0_20] : memref<9x3x128xbf16, #tpu.memory_space<vmem>>, vector<1x3x128xbf16>
    %38 = vector.shape_cast %37 : vector<1x3x128xbf16> to vector<3x128xbf16>
    %cst_21 = arith.constant dense<0.000000e+00> : vector<128x128xf32>
    %39 = tpu.matmul %36, %38, %cst_21 {dimension_numbers = #tpu.dot_dimension_numbers<[1], [0], [0], [1], [0, 0, 1, 1], [], []>} : vector<128x3xbf16>, vector<3x128xbf16>, vector<128x128xf32> -> vector<128x128xf32>
    %40 = arith.addf %33, %39 : vector<128x128xf32>
    %41 = vector.extract_strided_slice %2 {offsets = [1, 2, 0], sizes = [8, 16, 3], strides = [1, 1, 1]} : vector<18x18x3xf32> to vector<8x16x3xf32>
    %42 = vector.shape_cast %41 : vector<8x16x3xf32> to vector<128x3xf32>
    %43 = arith.truncf %42 : vector<128x3xf32> to vector<128x3xbf16>
    %c5 = arith.constant 5 : index
    %c0_22 = arith.constant 0 : index
    %c0_23 = arith.constant 0 : index
    %44 = vector.load %arg2[%c5, %c0_22, %c0_23] : memref<9x3x128xbf16, #tpu.memory_space<vmem>>, vector<1x3x128xbf16>
    %45 = vector.shape_cast %44 : vector<1x3x128xbf16> to vector<3x128xbf16>
    %cst_24 = arith.constant dense<0.000000e+00> : vector<128x128xf32>
    %46 = tpu.matmul %43, %45, %cst_24 {dimension_numbers = #tpu.dot_dimension_numbers<[1], [0], [0], [1], [0, 0, 1, 1], [], []>} : vector<128x3xbf16>, vector<3x128xbf16>, vector<128x128xf32> -> vector<128x128xf32>
    %47 = arith.addf %40, %46 : vector<128x128xf32>
    %48 = vector.extract_strided_slice %2 {offsets = [2, 0, 0], sizes = [8, 16, 3], strides = [1, 1, 1]} : vector<18x18x3xf32> to vector<8x16x3xf32>
    %49 = vector.shape_cast %48 : vector<8x16x3xf32> to vector<128x3xf32>
    %50 = arith.truncf %49 : vector<128x3xf32> to vector<128x3xbf16>
    %c6 = arith.constant 6 : index
    %c0_25 = arith.constant 0 : index
    %c0_26 = arith.constant 0 : index
    %51 = vector.load %arg2[%c6, %c0_25, %c0_26] : memref<9x3x128xbf16, #tpu.memory_space<vmem>>, vector<1x3x128xbf16>
    %52 = vector.shape_cast %51 : vector<1x3x128xbf16> to vector<3x128xbf16>
    %cst_27 = arith.constant dense<0.000000e+00> : vector<128x128xf32>
    %53 = tpu.matmul %50, %52, %cst_27 {dimension_numbers = #tpu.dot_dimension_numbers<[1], [0], [0], [1], [0, 0, 1, 1], [], []>} : vector<128x3xbf16>, vector<3x128xbf16>, vector<128x128xf32> -> vector<128x128xf32>
    %54 = arith.addf %47, %53 : vector<128x128xf32>
    %55 = vector.extract_strided_slice %2 {offsets = [2, 1, 0], sizes = [8, 16, 3], strides = [1, 1, 1]} : vector<18x18x3xf32> to vector<8x16x3xf32>
    %56 = vector.shape_cast %55 : vector<8x16x3xf32> to vector<128x3xf32>
    %57 = arith.truncf %56 : vector<128x3xf32> to vector<128x3xbf16>
    %c7 = arith.constant 7 : index
    %c0_28 = arith.constant 0 : index
    %c0_29 = arith.constant 0 : index
    %58 = vector.load %arg2[%c7, %c0_28, %c0_29] : memref<9x3x128xbf16, #tpu.memory_space<vmem>>, vector<1x3x128xbf16>
    %59 = vector.shape_cast %58 : vector<1x3x128xbf16> to vector<3x128xbf16>
    %cst_30 = arith.constant dense<0.000000e+00> : vector<128x128xf32>
    %60 = tpu.matmul %57, %59, %cst_30 {dimension_numbers = #tpu.dot_dimension_numbers<[1], [0], [0], [1], [0, 0, 1, 1], [], []>} : vector<128x3xbf16>, vector<3x128xbf16>, vector<128x128xf32> -> vector<128x128xf32>
    %61 = arith.addf %54, %60 : vector<128x128xf32>
    %62 = vector.extract_strided_slice %2 {offsets = [2, 2, 0], sizes = [8, 16, 3], strides = [1, 1, 1]} : vector<18x18x3xf32> to vector<8x16x3xf32>
    %63 = vector.shape_cast %62 : vector<8x16x3xf32> to vector<128x3xf32>
    %64 = arith.truncf %63 : vector<128x3xf32> to vector<128x3xbf16>
    %c8 = arith.constant 8 : index
    %c0_31 = arith.constant 0 : index
    %c0_32 = arith.constant 0 : index
    %65 = vector.load %arg2[%c8, %c0_31, %c0_32] : memref<9x3x128xbf16, #tpu.memory_space<vmem>>, vector<1x3x128xbf16>
    %66 = vector.shape_cast %65 : vector<1x3x128xbf16> to vector<3x128xbf16>
    %cst_33 = arith.constant dense<0.000000e+00> : vector<128x128xf32>
    %67 = tpu.matmul %64, %66, %cst_33 {dimension_numbers = #tpu.dot_dimension_numbers<[1], [0], [0], [1], [0, 0, 1, 1], [], []>} : vector<128x3xbf16>, vector<3x128xbf16>, vector<128x128xf32> -> vector<128x128xf32>
    %68 = arith.addf %61, %67 : vector<128x128xf32>
    %69 = vector.broadcast %3 : vector<1x128xf32> to vector<128x128xf32>
    %70 = arith.addf %68, %69 : vector<128x128xf32>
    %cst_34 = arith.constant 0.000000e+00 : f32
    %71 = vector.broadcast %cst_34 : f32 to vector<128x128xf32>
    %72 = arith.maximumf %70, %71 : vector<128x128xf32>
    %cst_35 = arith.constant dense<0.000000e+00> : vector<128xf32>
    %73 = vector.multi_reduction <add>, %72, %cst_35 [0] : vector<128x128xf32> to vector<128xf32>
    %74 = vector.shape_cast %73 : vector<128xf32> to vector<1x128xf32>
    %75 = arith.addf %4, %74 : vector<1x128xf32>
    %cst_36 = arith.constant 0.000000e+00 : f32
    %76 = vector.broadcast %cst_36 : f32 to vector<128x128xf32>
    %77 = vector.extract_strided_slice %2 {offsets = [8, 0, 0], sizes = [8, 16, 3], strides = [1, 1, 1]} : vector<18x18x3xf32> to vector<8x16x3xf32>
    %78 = vector.shape_cast %77 : vector<8x16x3xf32> to vector<128x3xf32>
    %79 = arith.truncf %78 : vector<128x3xf32> to vector<128x3xbf16>
    %c0_37 = arith.constant 0 : index
    %c0_38 = arith.constant 0 : index
    %c0_39 = arith.constant 0 : index
    %80 = vector.load %arg2[%c0_37, %c0_38, %c0_39] : memref<9x3x128xbf16, #tpu.memory_space<vmem>>, vector<1x3x128xbf16>
    %81 = vector.shape_cast %80 : vector<1x3x128xbf16> to vector<3x128xbf16>
    %cst_40 = arith.constant dense<0.000000e+00> : vector<128x128xf32>
    %82 = tpu.matmul %79, %81, %cst_40 {dimension_numbers = #tpu.dot_dimension_numbers<[1], [0], [0], [1], [0, 0, 1, 1], [], []>} : vector<128x3xbf16>, vector<3x128xbf16>, vector<128x128xf32> -> vector<128x128xf32>
    %83 = arith.addf %76, %82 : vector<128x128xf32>
    %84 = vector.extract_strided_slice %2 {offsets = [8, 1, 0], sizes = [8, 16, 3], strides = [1, 1, 1]} : vector<18x18x3xf32> to vector<8x16x3xf32>
    %85 = vector.shape_cast %84 : vector<8x16x3xf32> to vector<128x3xf32>
    %86 = arith.truncf %85 : vector<128x3xf32> to vector<128x3xbf16>
    %c1_41 = arith.constant 1 : index
    %c0_42 = arith.constant 0 : index
    %c0_43 = arith.constant 0 : index
    %87 = vector.load %arg2[%c1_41, %c0_42, %c0_43] : memref<9x3x128xbf16, #tpu.memory_space<vmem>>, vector<1x3x128xbf16>
    %88 = vector.shape_cast %87 : vector<1x3x128xbf16> to vector<3x128xbf16>
    %cst_44 = arith.constant dense<0.000000e+00> : vector<128x128xf32>
    %89 = tpu.matmul %86, %88, %cst_44 {dimension_numbers = #tpu.dot_dimension_numbers<[1], [0], [0], [1], [0, 0, 1, 1], [], []>} : vector<128x3xbf16>, vector<3x128xbf16>, vector<128x128xf32> -> vector<128x128xf32>
    %90 = arith.addf %83, %89 : vector<128x128xf32>
    %91 = vector.extract_strided_slice %2 {offsets = [8, 2, 0], sizes = [8, 16, 3], strides = [1, 1, 1]} : vector<18x18x3xf32> to vector<8x16x3xf32>
    %92 = vector.shape_cast %91 : vector<8x16x3xf32> to vector<128x3xf32>
    %93 = arith.truncf %92 : vector<128x3xf32> to vector<128x3xbf16>
    %c2_45 = arith.constant 2 : index
    %c0_46 = arith.constant 0 : index
    %c0_47 = arith.constant 0 : index
    %94 = vector.load %arg2[%c2_45, %c0_46, %c0_47] : memref<9x3x128xbf16, #tpu.memory_space<vmem>>, vector<1x3x128xbf16>
    %95 = vector.shape_cast %94 : vector<1x3x128xbf16> to vector<3x128xbf16>
    %cst_48 = arith.constant dense<0.000000e+00> : vector<128x128xf32>
    %96 = tpu.matmul %93, %95, %cst_48 {dimension_numbers = #tpu.dot_dimension_numbers<[1], [0], [0], [1], [0, 0, 1, 1], [], []>} : vector<128x3xbf16>, vector<3x128xbf16>, vector<128x128xf32> -> vector<128x128xf32>
    %97 = arith.addf %90, %96 : vector<128x128xf32>
    %98 = vector.extract_strided_slice %2 {offsets = [9, 0, 0], sizes = [8, 16, 3], strides = [1, 1, 1]} : vector<18x18x3xf32> to vector<8x16x3xf32>
    %99 = vector.shape_cast %98 : vector<8x16x3xf32> to vector<128x3xf32>
    %100 = arith.truncf %99 : vector<128x3xf32> to vector<128x3xbf16>
    %c3_49 = arith.constant 3 : index
    %c0_50 = arith.constant 0 : index
    %c0_51 = arith.constant 0 : index
    %101 = vector.load %arg2[%c3_49, %c0_50, %c0_51] : memref<9x3x128xbf16, #tpu.memory_space<vmem>>, vector<1x3x128xbf16>
    %102 = vector.shape_cast %101 : vector<1x3x128xbf16> to vector<3x128xbf16>
    %cst_52 = arith.constant dense<0.000000e+00> : vector<128x128xf32>
    %103 = tpu.matmul %100, %102, %cst_52 {dimension_numbers = #tpu.dot_dimension_numbers<[1], [0], [0], [1], [0, 0, 1, 1], [], []>} : vector<128x3xbf16>, vector<3x128xbf16>, vector<128x128xf32> -> vector<128x128xf32>
    %104 = arith.addf %97, %103 : vector<128x128xf32>
    %105 = vector.extract_strided_slice %2 {offsets = [9, 1, 0], sizes = [8, 16, 3], strides = [1, 1, 1]} : vector<18x18x3xf32> to vector<8x16x3xf32>
    %106 = vector.shape_cast %105 : vector<8x16x3xf32> to vector<128x3xf32>
    %107 = arith.truncf %106 : vector<128x3xf32> to vector<128x3xbf16>
    %c4_53 = arith.constant 4 : index
    %c0_54 = arith.constant 0 : index
    %c0_55 = arith.constant 0 : index
    %108 = vector.load %arg2[%c4_53, %c0_54, %c0_55] : memref<9x3x128xbf16, #tpu.memory_space<vmem>>, vector<1x3x128xbf16>
    %109 = vector.shape_cast %108 : vector<1x3x128xbf16> to vector<3x128xbf16>
    %cst_56 = arith.constant dense<0.000000e+00> : vector<128x128xf32>
    %110 = tpu.matmul %107, %109, %cst_56 {dimension_numbers = #tpu.dot_dimension_numbers<[1], [0], [0], [1], [0, 0, 1, 1], [], []>} : vector<128x3xbf16>, vector<3x128xbf16>, vector<128x128xf32> -> vector<128x128xf32>
    %111 = arith.addf %104, %110 : vector<128x128xf32>
    %112 = vector.extract_strided_slice %2 {offsets = [9, 2, 0], sizes = [8, 16, 3], strides = [1, 1, 1]} : vector<18x18x3xf32> to vector<8x16x3xf32>
    %113 = vector.shape_cast %112 : vector<8x16x3xf32> to vector<128x3xf32>
    %114 = arith.truncf %113 : vector<128x3xf32> to vector<128x3xbf16>
    %c5_57 = arith.constant 5 : index
    %c0_58 = arith.constant 0 : index
    %c0_59 = arith.constant 0 : index
    %115 = vector.load %arg2[%c5_57, %c0_58, %c0_59] : memref<9x3x128xbf16, #tpu.memory_space<vmem>>, vector<1x3x128xbf16>
    %116 = vector.shape_cast %115 : vector<1x3x128xbf16> to vector<3x128xbf16>
    %cst_60 = arith.constant dense<0.000000e+00> : vector<128x128xf32>
    %117 = tpu.matmul %114, %116, %cst_60 {dimension_numbers = #tpu.dot_dimension_numbers<[1], [0], [0], [1], [0, 0, 1, 1], [], []>} : vector<128x3xbf16>, vector<3x128xbf16>, vector<128x128xf32> -> vector<128x128xf32>
    %118 = arith.addf %111, %117 : vector<128x128xf32>
    %119 = vector.extract_strided_slice %2 {offsets = [10, 0, 0], sizes = [8, 16, 3], strides = [1, 1, 1]} : vector<18x18x3xf32> to vector<8x16x3xf32>
    %120 = vector.shape_cast %119 : vector<8x16x3xf32> to vector<128x3xf32>
    %121 = arith.truncf %120 : vector<128x3xf32> to vector<128x3xbf16>
    %c6_61 = arith.constant 6 : index
    %c0_62 = arith.constant 0 : index
    %c0_63 = arith.constant 0 : index
    %122 = vector.load %arg2[%c6_61, %c0_62, %c0_63] : memref<9x3x128xbf16, #tpu.memory_space<vmem>>, vector<1x3x128xbf16>
    %123 = vector.shape_cast %122 : vector<1x3x128xbf16> to vector<3x128xbf16>
    %cst_64 = arith.constant dense<0.000000e+00> : vector<128x128xf32>
    %124 = tpu.matmul %121, %123, %cst_64 {dimension_numbers = #tpu.dot_dimension_numbers<[1], [0], [0], [1], [0, 0, 1, 1], [], []>} : vector<128x3xbf16>, vector<3x128xbf16>, vector<128x128xf32> -> vector<128x128xf32>
    %125 = arith.addf %118, %124 : vector<128x128xf32>
    %126 = vector.extract_strided_slice %2 {offsets = [10, 1, 0], sizes = [8, 16, 3], strides = [1, 1, 1]} : vector<18x18x3xf32> to vector<8x16x3xf32>
    %127 = vector.shape_cast %126 : vector<8x16x3xf32> to vector<128x3xf32>
    %128 = arith.truncf %127 : vector<128x3xf32> to vector<128x3xbf16>
    %c7_65 = arith.constant 7 : index
    %c0_66 = arith.constant 0 : index
    %c0_67 = arith.constant 0 : index
    %129 = vector.load %arg2[%c7_65, %c0_66, %c0_67] : memref<9x3x128xbf16, #tpu.memory_space<vmem>>, vector<1x3x128xbf16>
    %130 = vector.shape_cast %129 : vector<1x3x128xbf16> to vector<3x128xbf16>
    %cst_68 = arith.constant dense<0.000000e+00> : vector<128x128xf32>
    %131 = tpu.matmul %128, %130, %cst_68 {dimension_numbers = #tpu.dot_dimension_numbers<[1], [0], [0], [1], [0, 0, 1, 1], [], []>} : vector<128x3xbf16>, vector<3x128xbf16>, vector<128x128xf32> -> vector<128x128xf32>
    %132 = arith.addf %125, %131 : vector<128x128xf32>
    %133 = vector.extract_strided_slice %2 {offsets = [10, 2, 0], sizes = [8, 16, 3], strides = [1, 1, 1]} : vector<18x18x3xf32> to vector<8x16x3xf32>
    %134 = vector.shape_cast %133 : vector<8x16x3xf32> to vector<128x3xf32>
    %135 = arith.truncf %134 : vector<128x3xf32> to vector<128x3xbf16>
    %c8_69 = arith.constant 8 : index
    %c0_70 = arith.constant 0 : index
    %c0_71 = arith.constant 0 : index
    %136 = vector.load %arg2[%c8_69, %c0_70, %c0_71] : memref<9x3x128xbf16, #tpu.memory_space<vmem>>, vector<1x3x128xbf16>
    %137 = vector.shape_cast %136 : vector<1x3x128xbf16> to vector<3x128xbf16>
    %cst_72 = arith.constant dense<0.000000e+00> : vector<128x128xf32>
    %138 = tpu.matmul %135, %137, %cst_72 {dimension_numbers = #tpu.dot_dimension_numbers<[1], [0], [0], [1], [0, 0, 1, 1], [], []>} : vector<128x3xbf16>, vector<3x128xbf16>, vector<128x128xf32> -> vector<128x128xf32>
    %139 = arith.addf %132, %138 : vector<128x128xf32>
    %140 = vector.broadcast %3 : vector<1x128xf32> to vector<128x128xf32>
    %141 = arith.addf %139, %140 : vector<128x128xf32>
    %cst_73 = arith.constant 0.000000e+00 : f32
    %142 = vector.broadcast %cst_73 : f32 to vector<128x128xf32>
    %143 = arith.maximumf %141, %142 : vector<128x128xf32>
    %cst_74 = arith.constant dense<0.000000e+00> : vector<128xf32>
    %144 = vector.multi_reduction <add>, %143, %cst_74 [0] : vector<128x128xf32> to vector<128xf32>
    %145 = vector.shape_cast %144 : vector<128xf32> to vector<1x128xf32>
    %146 = arith.addf %75, %145 : vector<1x128xf32>
    %cst_75 = arith.constant 3.906250e-03 : f32
    %147 = vector.broadcast %cst_75 : f32 to vector<1x128xf32>
    %148 = arith.mulf %146, %147 : vector<1x128xf32>
    %149 = arith.truncf %148 : vector<1x128xf32> to vector<1x128xbf16>
    %c0_76 = arith.constant 0 : index
    %c0_77 = arith.constant 0 : index
    %c0_78 = arith.constant 0 : index
    %150 = vector.load %arg4[%c0_76, %c0_77, %c0_78] : memref<1x1x128xbf16, #tpu.memory_space<vmem>>, vector<1x1x128xbf16>
    %151 = vector.shape_cast %150 : vector<1x1x128xbf16> to vector<1x128xbf16>
    %152 = vector.shape_cast %149 : vector<1x128xbf16> to vector<1x1x128xbf16>
    tpu.vector_store %arg4[%c0_76, %c0_77, %c0_78], %152 {strides = array<i32>} : memref<1x1x128xbf16, #tpu.memory_space<vmem>>, vector<1x1x128xbf16>,
    return
  }
  func.func @transform_0(%arg0: i32) -> (i32, i32, i32, i32) {
    %c0_i32 = arith.constant 0 : i32
    %c0_i32_0 = arith.constant 0 : i32
    %c0_i32_1 = arith.constant 0 : i32
    %c0_i32_2 = arith.constant 0 : i32
    return %arg0, %c0_i32, %c0_i32_0, %c0_i32_1 : i32, i32, i32, i32
  }
  func.func @transform_1(%arg0: i32) -> (i32, i32, i32) {
    %c0_i32 = arith.constant 0 : i32
    %c0_i32_0 = arith.constant 0 : i32
    %c0_i32_1 = arith.constant 0 : i32
    %c0_i32_2 = arith.constant 0 : i32
    return %c0_i32, %c0_i32_0, %c0_i32_1 : i32, i32, i32
  }
  func.func @transform_2(%arg0: i32) -> (i32, i32) {
    %c0_i32 = arith.constant 0 : i32
    %c0_i32_0 = arith.constant 0 : i32
    %c0_i32_1 = arith.constant 0 : i32
    return %c0_i32, %c0_i32_0 : i32, i32
  }
  func.func @transform_3(%arg0: i32) -> (i32, i32, i32) {
    %c0_i32 = arith.constant 0 : i32
    %c0_i32_0 = arith.constant 0 : i32
    %c0_i32_1 = arith.constant 0 : i32
    return %arg0, %c0_i32, %c0_i32_0 : i32, i32, i32
  }
}

module attributes {stable_mosaic.version = 11 : i64} {
  func.func @_head_kernel(%arg0: i32, %arg1: memref<2x128xbf16, #tpu.memory_space<vmem>>, %arg2: memref<128x512xbf16, #tpu.memory_space<vmem>>, %arg3: memref<1x512xf32, #tpu.memory_space<vmem>>, %arg4: memref<512x128xbf16, #tpu.memory_space<vmem>>, %arg5: memref<1x128xf32, #tpu.memory_space<vmem>>, %arg6: memref<2x128xf32, #tpu.memory_space<vmem>>) attributes {dimension_semantics = [#tpu.dimension_semantics<arbitrary>], iteration_bounds = array<i64: 1>, scalar_prefetch = 0 : i64, scratch_operands = 0 : i64, tpu.core_type = #tpu.core_type<tc>, window_params = [{pipeline_mode = #tpu.pipeline_mode<synchronous>, transform_indices = @transform_0, window_bounds = array<i64: 2, 128>}, {pipeline_mode = #tpu.pipeline_mode<synchronous>, transform_indices = @transform_1, window_bounds = array<i64: 128, 512>}, {pipeline_mode = #tpu.pipeline_mode<synchronous>, transform_indices = @transform_2, window_bounds = array<i64: 1, 512>}, {pipeline_mode = #tpu.pipeline_mode<synchronous>, transform_indices = @transform_3, window_bounds = array<i64: 512, 128>}, {pipeline_mode = #tpu.pipeline_mode<synchronous>, transform_indices = @transform_4, window_bounds = array<i64: 1, 128>}, {pipeline_mode = #tpu.pipeline_mode<synchronous>, transform_indices = @transform_5, window_bounds = array<i64: 2, 128>}]} {
    %c0 = arith.constant 0 : index
    %c0_0 = arith.constant 0 : index
    %0 = vector.load %arg1[%c0, %c0_0] : memref<2x128xbf16, #tpu.memory_space<vmem>>, vector<2x128xbf16>
    %c0_1 = arith.constant 0 : index
    %c0_2 = arith.constant 0 : index
    %1 = vector.load %arg2[%c0_1, %c0_2] : memref<128x512xbf16, #tpu.memory_space<vmem>>, vector<128x512xbf16>
    %cst = arith.constant dense<0.000000e+00> : vector<2x512xf32>
    %2 = tpu.matmul %0, %1, %cst {dimension_numbers = #tpu.dot_dimension_numbers<[1], [0], [0], [1], [0, 0, 1, 1], [], []>} : vector<2x128xbf16>, vector<128x512xbf16>, vector<2x512xf32> -> vector<2x512xf32>
    %c0_3 = arith.constant 0 : index
    %c0_4 = arith.constant 0 : index
    %3 = vector.load %arg3[%c0_3, %c0_4] : memref<1x512xf32, #tpu.memory_space<vmem>>, vector<1x512xf32>
    %4 = vector.broadcast %3 : vector<1x512xf32> to vector<2x512xf32>
    %5 = arith.addf %2, %4 : vector<2x512xf32>
    %6 = arith.truncf %5 : vector<2x512xf32> to vector<2x512xbf16>
    %c0_5 = arith.constant 0 : index
    %c0_6 = arith.constant 0 : index
    %7 = vector.load %arg4[%c0_5, %c0_6] : memref<512x128xbf16, #tpu.memory_space<vmem>>, vector<512x128xbf16>
    %cst_7 = arith.constant dense<0.000000e+00> : vector<2x128xf32>
    %8 = tpu.matmul %6, %7, %cst_7 {dimension_numbers = #tpu.dot_dimension_numbers<[1], [0], [0], [1], [0, 0, 1, 1], [], []>} : vector<2x512xbf16>, vector<512x128xbf16>, vector<2x128xf32> -> vector<2x128xf32>
    %c0_8 = arith.constant 0 : index
    %c0_9 = arith.constant 0 : index
    %9 = vector.load %arg5[%c0_8, %c0_9] : memref<1x128xf32, #tpu.memory_space<vmem>>, vector<1x128xf32>
    %10 = vector.broadcast %9 : vector<1x128xf32> to vector<2x128xf32>
    %11 = arith.addf %8, %10 : vector<2x128xf32>
    %12 = arith.negf %11 : vector<2x128xf32>
    %13 = math.exp %12 : vector<2x128xf32>
    %cst_10 = arith.constant 1.000000e+00 : f32
    %14 = vector.broadcast %cst_10 : f32 to vector<2x128xf32>
    %15 = arith.addf %14, %13 : vector<2x128xf32>
    %16 = arith.divf %14, %15 : vector<2x128xf32>
    %c0_11 = arith.constant 0 : index
    %c0_12 = arith.constant 0 : index
    %17 = vector.load %arg6[%c0_11, %c0_12] : memref<2x128xf32, #tpu.memory_space<vmem>>, vector<2x128xf32>
    tpu.vector_store %arg6[%c0_11, %c0_12], %16 {strides = array<i32>} : memref<2x128xf32, #tpu.memory_space<vmem>>, vector<2x128xf32>,
    return
  }
  func.func @transform_0(%arg0: i32) -> (i32, i32) {
    %c0_i32 = arith.constant 0 : i32
    %c0_i32_0 = arith.constant 0 : i32
    %c0_i32_1 = arith.constant 0 : i32
    return %c0_i32, %c0_i32_0 : i32, i32
  }
  func.func @transform_1(%arg0: i32) -> (i32, i32) {
    %c0_i32 = arith.constant 0 : i32
    %c0_i32_0 = arith.constant 0 : i32
    %c0_i32_1 = arith.constant 0 : i32
    return %c0_i32, %c0_i32_0 : i32, i32
  }
  func.func @transform_2(%arg0: i32) -> (i32, i32) {
    %c0_i32 = arith.constant 0 : i32
    %c0_i32_0 = arith.constant 0 : i32
    %c0_i32_1 = arith.constant 0 : i32
    return %c0_i32, %c0_i32_0 : i32, i32
  }
  func.func @transform_3(%arg0: i32) -> (i32, i32) {
    %c0_i32 = arith.constant 0 : i32
    %c0_i32_0 = arith.constant 0 : i32
    %c0_i32_1 = arith.constant 0 : i32
    return %c0_i32, %c0_i32_0 : i32, i32
  }
  func.func @transform_4(%arg0: i32) -> (i32, i32) {
    %c0_i32 = arith.constant 0 : i32
    %c0_i32_0 = arith.constant 0 : i32
    %c0_i32_1 = arith.constant 0 : i32
    return %c0_i32, %c0_i32_0 : i32, i32
  }
  func.func @transform_5(%arg0: i32) -> (i32, i32) {
    %c0_i32 = arith.constant 0 : i32
    %c0_i32_0 = arith.constant 0 : i32
    %c0_i32_1 = arith.constant 0 : i32
    return %c0_i32, %c0_i32_0 : i32, i32
  }
}

</mosaic_0001>

<bundles_post_ra>
// kernel: forward.3
= control target key start
LH: loop header
LB: loop body
LE: loop exit
PB: predicated region body
PF: predicated region fallthrough
CT: control target
= control target key end

     0   :  { %v907_v2 = vmov 0   ;;  %s1152_s0 = inlined_call_operand.vmem [shape: bf16[2,128], index: 0, kind: input, shape index: {}]   ;;  %s1153_s1 = inlined_call_operand.vmem [shape: bf16[128,512], index: 1, kind: input, shape index: {}]   ;;  %s1154_s2 = inlined_call_operand.vmem [shape: f32[1,512], index: 2, kind: input, shape index: {}]   ;;  %s1155_s3 = inlined_call_operand.vmem [shape: bf16[512,128], index: 3, kind: input, shape index: {}]   ;;  %s1156_s4 = inlined_call_operand.vmem [shape: f32[1,128], index: 4, kind: input, shape index: {}]   ;;  %s1157_s5 = inlined_call_operand.hbm [shape: f32[2,128], index: 5, kind: output, shape index: {}]  }
   0x1   :  { %v799_v0 = vld [vmem:[%s1153_s1 + $0x4] ss:$16 sps:$4 sm:$0xff]   ;;  %v801_v1 = vld [vmem:[%s1153_s1 + $0xc] ss:$16 sps:$4 sm:$0xff]   ;;  %269 = vmatprep.mubr.bf16.mxu0 %v907_v2  ;;  %310 = vmatprep.mubr.bf16.mxu1 %v907_v2  ;;  %v803_v3 = vld [vmem:[%s1153_s1] ss:$16 sps:$4 sm:$0xff]  }
   0x2   :  { %237 = vmatprep.subr.bf16.mxu0 %v799_v0  ;;  %v804_v4 = vld [vmem:[%s1153_s1 + $0x8] ss:$16 sps:$4 sm:$0xff]   ;;  %278 = vmatprep.subr.bf16.mxu1 %v801_v1  ;;  %v805_v5 = vld [vmem:[%s1153_s1 + $0x24] ss:$16 sps:$4 sm:$0xff]   ;;  %v807_v6 = vld [vmem:[%s1153_s1 + $0x2c] ss:$16 sps:$4 sm:$0xff]  }
   0x3   :  { %238 = vmatpush1.bf16.msra.mxu0 %v803_v3  ;;  %279 = vmatpush1.bf16.msra.mxu1 %v804_v4  ;;  %v809_v7 = vld [vmem:[%s1153_s1 + $0x20] ss:$16 sps:$4 sm:$0xff]   ;;  %v810_v8 = vld [vmem:[%s1153_s1 + $0x28] ss:$16 sps:$4 sm:$0xff]   ;;  %v811_v9 = vld [vmem:[%s1153_s1 + $0x44] ss:$16 sps:$4 sm:$0xff]  }
   0x4   :  { %239 = vmatprep.subr.bf16.mxu0 %v805_v5  ;;  %280 = vmatprep.subr.bf16.mxu1 %v807_v6  ;;  %v813_v10 = vld [vmem:[%s1153_s1 + $0x4c] ss:$16 sps:$4 sm:$0xff]   ;;  %v815_v11 = vld [vmem:[%s1153_s1 + $0x40] ss:$16 sps:$4 sm:$0xff]   ;;  %v816_v12 = vld [vmem:[%s1153_s1 + $0x48] ss:$16 sps:$4 sm:$0xff]  }
   0x5   :  { %v817_v13 = vld [vmem:[%s1153_s1 + $0x64] ss:$16 sps:$4 sm:$0xff]   ;;  %v819_v14 = vld [vmem:[%s1153_s1 + $0x6c] ss:$16 sps:$4 sm:$0xff]   ;;  %v821_v15 = vld [vmem:[%s1153_s1 + $0x60] ss:$16 sps:$4 sm:$0xff]  }
   0x6   :  { %v822_v16 = vld [vmem:[%s1153_s1 + $0x68] ss:$16 sps:$4 sm:$0xff]   ;;  %v823_v17 = vld [vmem:[%s1153_s1 + $0x84] ss:$16 sps:$4 sm:$0xff]   ;;  %v825_v18 = vld [vmem:[%s1153_s1 + $0x8c] ss:$16 sps:$4 sm:$0xff]  }
   0x7   :  { %240 = vmatpush1.bf16.msra.mxu0 %v809_v7  ;;  %281 = vmatpush1.bf16.msra.mxu1 %v810_v8  ;;  %v827_v19 = vld [vmem:[%s1153_s1 + $0x80] ss:$16 sps:$4 sm:$0xff]   ;;  %v828_v20 = vld [vmem:[%s1153_s1 + $0x88] ss:$16 sps:$4 sm:$0xff]   ;;  %v829_v21 = vld [vmem:[%s1153_s1 + $0xa4] ss:$16 sps:$4 sm:$0xff]  }
   0x8   :  { %241 = vmatprep.subr.bf16.mxu0 %v811_v9  ;;  %282 = vmatprep.subr.bf16.mxu1 %v813_v10  ;;  %v831_v22 = vld [vmem:[%s1153_s1 + $0xac] ss:$16 sps:$4 sm:$0xff]   ;;  %v833_v23 = vld [vmem:[%s1153_s1 + $0xa0] ss:$16 sps:$4 sm:$0xff]   ;;  %v834_v24 = vld [vmem:[%s1153_s1 + $0xa8] ss:$16 sps:$4 sm:$0xff]  }
   0x9   :  { %v835_v25 = vld [vmem:[%s1153_s1 + $0xc4] ss:$16 sps:$4 sm:$0xff]   ;;  %v837_v26 = vld [vmem:[%s1153_s1 + $0xcc] ss:$16 sps:$4 sm:$0xff]   ;;  %v839_v27 = vld [vmem:[%s1153_s1 + $0xc0] ss:$16 sps:$4 sm:$0xff]  }
   0xa   :  { %v840_v28 = vld [vmem:[%s1153_s1 + $0xc8] ss:$16 sps:$4 sm:$0xff]   ;;  %v841_v29 = vld [vmem:[%s1153_s1 + $0xe4] ss:$16 sps:$4 sm:$0xff]   ;;  %v843_v30 = vld [vmem:[%s1153_s1 + $0xec] ss:$16 sps:$4 sm:$0xff]  }
   0xb   :  { %242 = vmatpush1.bf16.msra.mxu0 %v815_v11  ;;  %283 = vmatpush1.bf16.msra.mxu1 %v816_v12  ;;  %v845_v31 = vld [vmem:[%s1153_s1 + $0xe0] ss:$16 sps:$4 sm:$0xff]   ;;  %v846_v32 = vld [vmem:[%s1153_s1 + $0xe8] ss:$16 sps:$4 sm:$0xff]  }
   0xc   :  { %243 = vmatprep.subr.bf16.mxu0 %v817_v13  ;;  %284 = vmatprep.subr.bf16.mxu1 %v819_v14  ;;  %v847_v33 = vld [vmem:[%s1155_s3 + $0x40] sm:$0xff]   ;;  %v851_v38 = vld [vmem:[%s1155_s3 + $0x48] sm:$0xff]   ;;  %v855_v42 = vld [vmem:[%s1155_s3 + $0x50] sm:$0xff]  }
   0xd   :  { %v848_v34 = vld [vmem:[%s1155_s3 + $0xc0] sm:$0xff]   ;;  %v852_v39 = vld [vmem:[%s1155_s3 + $0xc8] sm:$0xff]   ;;  %v856_v43 = vld [vmem:[%s1155_s3 + $0xd0] sm:$0xff]  }
   0xe   :  { %v22_v35 = vld [vmem:[%s1152_s0] sm:$0x1]  ;;  %v853_v40 = vld [vmem:[%s1155_s3 + $0x8] sm:$0xff]   ;;  %v857_v44 = vld [vmem:[%s1155_s3 + $0x10] sm:$0xff]  }
   0xf   :  { %244 = vmatpush1.bf16.msra.mxu0 %v821_v15  ;;  %285 = vmatpush1.bf16.msra.mxu1 %v822_v16  ;;  %v849_v36 = vld [vmem:[%s1155_s3] sm:$0xff]   ;;  %v854_v41 = vld [vmem:[%s1155_s3 + $0x88] sm:$0xff]   ;;  %v858_v45 = vld [vmem:[%s1155_s3 + $0x90] sm:$0xff]  }
  0x10   :  { %245 = vmatprep.subr.bf16.mxu0 %v823_v17  ;;  %286 = vmatprep.subr.bf16.mxu1 %v825_v18  ;;  %v850_v37 = vld [vmem:[%s1155_s3 + $0x80] sm:$0xff]   ;;  %v859_v46 = vld [vmem:[%s1155_s3 + $0x58] sm:$0xff]   ;;  %v867_v54 = vld [vmem:[%s1155_s3 + $0x68] sm:$0xff]  }
  0x11   :  { %v860_v47 = vld [vmem:[%s1155_s3 + $0xd8] sm:$0xff]   ;;  %v863_v50 = vld [vmem:[%s1155_s3 + $0x60] sm:$0xff]   ;;  %v868_v55 = vld [vmem:[%s1155_s3 + $0xe8] sm:$0xff]  }
  0x12   :  { %v861_v48 = vld [vmem:[%s1155_s3 + $0x18] sm:$0xff]   ;;  %v864_v51 = vld [vmem:[%s1155_s3 + $0xe0] sm:$0xff]   ;;  %v869_v56 = vld [vmem:[%s1155_s3 + $0x28] sm:$0xff]  }
  0x13   :  { %246 = vmatpush1.bf16.msra.mxu0 %v827_v19  ;;  %287 = vmatpush1.bf16.msra.mxu1 %v828_v20  ;;  %v862_v49 = vld [vmem:[%s1155_s3 + $0x98] sm:$0xff]   ;;  %v865_v52 = vld [vmem:[%s1155_s3 + $0x20] sm:$0xff]   ;;  %v870_v57 = vld [vmem:[%s1155_s3 + $0xa8] sm:$0xff]  }
  0x14   :  { %247 = vmatprep.subr.bf16.mxu0 %v829_v21  ;;  %288 = vmatprep.subr.bf16.mxu1 %v831_v22  ;;  %v866_v53 = vld [vmem:[%s1155_s3 + $0xa0] sm:$0xff]  }
  0x17   :  { %248 = vmatpush1.bf16.msra.mxu0 %v833_v23  ;;  %289 = vmatpush1.bf16.msra.mxu1 %v834_v24 }
  0x18   :  { %249 = vmatprep.subr.bf16.mxu0 %v835_v25  ;;  %290 = vmatprep.subr.bf16.mxu1 %v837_v26 }
  0x1b   :  { %250 = vmatpush1.bf16.msra.mxu0 %v839_v27  ;;  %291 = vmatpush1.bf16.msra.mxu1 %v840_v28 }
  0x1c   :  { %251 = vmatprep.subr.bf16.mxu0 %v841_v29  ;;  %292 = vmatprep.subr.bf16.mxu1 %v843_v30 }
  0x1f   :  { %252 = vmatpush1.bf16.msra.mxu0 %v845_v31  ;;  %293 = vmatpush1.bf16.msra.mxu1 %v846_v32 }
  0x20   :  { %753 = vmatprep.subr.bf16.mxu0 %v847_v33  ;;  %775 = vmatprep.subr.bf16.mxu1 %v848_v34 }
  0x22   :  { %270 = vmatmul.mubr.bf16.vlgmr.msra.gmra.mrb[0].mxu0 %v22_v35  ;;  %311 = vmatmul.mubr.bf16.vlgmr.msra.gmra.mrb[0].mxu1 %v22_v35 }
  0x23   :  { %754 = vmatpush3.bf16.msra.mxu0 %v849_v36  ;;  %776 = vmatpush3.bf16.msra.mxu1 %v850_v37 }
  0x24   :  { %755 = vmatprep.subr.bf16.mxu0 %v851_v38  ;;  %777 = vmatprep.subr.bf16.mxu1 %v852_v39 }
  0x27   :  { %756 = vmatpush3.bf16.msra.mxu0 %v853_v40  ;;  %778 = vmatpush3.bf16.msra.mxu1 %v854_v41 }
  0x28   :  { %757 = vmatprep.subr.bf16.mxu0 %v855_v42  ;;  %779 = vmatprep.subr.bf16.mxu1 %v856_v43 }
  0x2b   :  { %758 = vmatpush3.bf16.msra.mxu0 %v857_v44  ;;  %780 = vmatpush3.bf16.msra.mxu1 %v858_v45 }
  0x2c   :  { %759 = vmatprep.subr.bf16.mxu0 %v859_v46  ;;  %781 = vmatprep.subr.bf16.mxu1 %v860_v47 }
  0x2f   :  { %760 = vmatpush3.bf16.msra.mxu0 %v861_v48  ;;  %782 = vmatpush3.bf16.msra.mxu1 %v862_v49 }
  0x30   :  { %761 = vmatprep.subr.bf16.mxu0 %v863_v50  ;;  %783 = vmatprep.subr.bf16.mxu1 %v864_v51 }
  0x33   :  { %762 = vmatpush3.bf16.msra.mxu0 %v865_v52  ;;  %784 = vmatpush3.bf16.msra.mxu1 %v866_v53 }
  0x34   :  { %10 = vsyncpa [#allocation3], 0  ;;  %763 = vmatprep.subr.bf16.mxu0 %v867_v54  ;;  %785 = vmatprep.subr.bf16.mxu1 %v868_v55  ;;  %v871_v58 = vld [vmem:[%s1155_s3 + $0x70] sm:$0xff]   ;;  %v875_v62 = vld [vmem:[%s1155_s3 + $0x78] sm:$0xff]   ;;  %v57_v2 = vlaneseq  ;;  %s908_s0 = smov [#allocation2]  }
  0x35   :  { %v872_v59 = vld [vmem:[%s1155_s3 + $0xf0] sm:$0xff]   ;;  %v876_v63 = vld [vmem:[%s1155_s3 + $0xf8] sm:$0xff]   ;;  %v55_v6 = vld [vmem:[%s1154_s2] sm:$0xf]  ;;  %s679_s20 = sshll.u32 %s908_s0, 4  ;;  %s680_s20 = int_to_ptr.vmem [resolvable:$true] %s679_s20 }
  0x36   :  { %v873_v60 = vld [vmem:[%s1155_s3 + $0x30] sm:$0xff]   ;;  %v877_v0 = vld [vmem:[%s1155_s3 + $0x38] sm:$0xff]   ;;  %v58_v3 = vshrl.u32 %v57_v2, 7  ;;  %v719_v31 = vld [vmem:[%s1156_s4] ss:$0 sm:$0xff]  ;;  %s883_s4 = scalar_lea.vmem %s680_s20, 32  ;;  %p888_p1 = scmp.lt.s32.totalorder %s680_s20, %s680_s20 }
  0x37   :  { %764 = vmatpush3.bf16.msra.mxu0 %v869_v56  ;;  %786 = vmatpush3.bf16.msra.mxu1 %v870_v57  ;;  %v874_v61 = vld [vmem:[%s1155_s3 + $0xb0] sm:$0xff]   ;;  %v878_v1 = vld [vmem:[%s1155_s3 + $0xb8] sm:$0xff]   ;;  %p884_p0 = scmp.ne.s32.totalorder %s680_s20, %s883_s4  ;;  %p889_p2 = scmp.lt.s32.totalorder %s883_s4, %s883_s4 }
  0x38   :  { %765 = vmatprep.subr.bf16.mxu0 %v871_v58  ;;  %787 = vmatprep.subr.bf16.mxu1 %v872_v59  ;;  %v59_v4 = vsub.s32 0, %v58_v3  ;;  %v67_v5 = vsub.s32 2, %v58_v3  ;;  %v63_v7 = vsub.s32 1, %v58_v3  ;;  %v71_v8 = vsub.s32 3, %v58_v3 }
  0x39   :  { %p890_p3 = por %p889_p2, %p888_p1 }
  0x3a   :  { %v60_v9 = vrot.slane %v55_v6, %v59_v4  ;;  %v68_v10 = vrot.slane %v55_v6, %v67_v5  ;;  %v64_v11 = vrot.slane %v55_v6, %v63_v7  ;;  %v72_v12 = vrot.slane %v55_v6, %v71_v8 }
  0x3b   :  { %766 = vmatpush3.bf16.msra.mxu0 %v873_v60  ;;  %788 = vmatpush3.bf16.msra.mxu1 %v874_v61  ;;  %p891_p4 = pnand %p890_p3, %p884_p0 }
  0x3c   :  { %767 = vmatprep.subr.bf16.mxu0 %v875_v62  ;;  %789 = vmatprep.subr.bf16.mxu1 %v876_v63 }
  0x3f   :  { %768 = vmatpush3.bf16.msra.mxu0 %v877_v0  ;;  %790 = vmatpush3.bf16.msra.mxu1 %v878_v1 }
  0xf5   :  { %v271_v13 = vpop.f32.mrb[0].mxu0  ;;  %v312_v14 = vpop.f32.mrb[0].mxu1 }
  0xf6   :  { %v272_v15 = vadd.f32 %v271_v13, %v60_v9  ;;  %v313_v16 = vadd.f32 %v312_v14, %v68_v10  ;;  %v273_v17 = vpop.f32.mrb[1].mxu0  ;;  %v314_v18 = vpop.f32.mrb[1].mxu1 }
  0xf7   :  { %v274_v19 = vadd.f32 %v273_v17, %v64_v11  ;;  %v315_v20 = vadd.f32 %v314_v18, %v72_v12  ;;  %v275_v21 = vpop.f32.mrb[2].mxu0  ;;  %v316_v22 = vpop.f32.mrb[2].mxu1 }
  0xf8   :  { %v321_v23 = vpack.c.bf16 %v313_v16, %v313_v16  ;;  %v276_v24 = vpop.f32.mrb[3].mxu0  ;;  %v317_v25 = vpop.f32.mrb[3].mxu1  ;;  %v319_v28 = vpack.c.bf16 %v272_v15, %v272_v15 }
  0xf9   :  { %v320_v26 = vpack.c.bf16 %v274_v19, %v274_v19  ;;  %v322_v27 = vpack.c.bf16 %v315_v20, %v315_v20 }
  0xfb   :  { %618 = vmatprep.mubr.bf16.mxu0 %v320_v26  ;;  %658 = vmatprep.mubr.bf16.mxu1 %v322_v27 }
  0xfc   :  { %619 = vmatmul.mubr.bf16.vlgmr.msra.gmra.mrb[4].mxu0 %v319_v28  ;;  %659 = vmatmul.mubr.bf16.vlgmr.msra.gmra.mrb[4].mxu1 %v321_v23 }
 0x1cf   :  { %v769_v29 = vpop.f32.mrb[4].mxu0  ;;  %v791_v30 = vpop.f32.mrb[4].mxu1 }
 0x1d0   :  { %v770_v32 = vpop.f32.mrb[5].mxu0  ;;  %v792_v33 = vpop.f32.mrb[5].mxu1 }
 0x1d1   :  { %v771_v34 = vadd.f32 %v770_v32, %v769_v29  ;;  %v793_v35 = vadd.f32 %v792_v33, %v791_v30  ;;  %v772_v36 = vpop.f32.mrb[6].mxu0  ;;  %v794_v37 = vpop.f32.mrb[6].mxu1 }
 0x1d2   :  { %v773_v38 = vpop.f32.mrb[7].mxu0  ;;  %v795_v39 = vpop.f32.mrb[7].mxu1 }
 0x1d3   :  { %v621_v40 = vadd.f32 %v771_v34, %v719_v31 }
 0x1d5   :  { %v661_v41 = vadd.f32 %v793_v35, %v621_v40 }
 0x1d7   :  { %v752_v42 = vmul.f32 -1.442695, %v661_v41 }
 0x1d9   :  { %879 = vpow2.f32 %v752_v42 }
 0x1e3   :  { %v880_v43 = vpop.eup %879 }
 0x1e4   :  { %v669_v44 = vadd.f32 1.0, %v880_v43 }
 0x1e6   :  { %881 = vrcp.f32 %v669_v44 }
 0x1f0   :  { %v882_v45 = vpop.eup %881 }
 0x1f1   :  { %672 = vst [vmem:[#allocation2] sm:$0x3] %v882_v45 }
 0x1f2   :  { %894 = shalt.err (!%p891_p4)
}
 0x1f3   :  { %s895_s23 = scalar_lea.hbm %s1157_s5, 32 }
 0x1f4   :  { %p896_p5 = scmp.ne.s32.totalorder %s1157_s5, %s895_s23  ;;  %p899_p6 = scmp.lt.u32.totalorder %s895_s23, %s1157_s5 }
 0x1f6   :  { %p901_p7 = pnand %p899_p6, %p896_p5 }
 0x1f8   :  { %904 = shalt.err (!%p901_p7)
}
 0x1f9   :  { %682 = dma.vmem_to_hbm [thread:$0]  %s680_s20, 32, %s1157_s5, [#allocation3]  }
 0x1fa   :  { %905 = dma.done.wait [#allocation3], 32  }
 0x1fb   :  { %906 = vsyncadd [#allocation3], 4294967264 }
 0x1fc   :  { %686 = vsyncpa [#allocation3], 1 }

// kernel: forward.2
= control target key start
LH: loop header
LB: loop body
LE: loop exit
PB: predicated region body
PF: predicated region fallthrough
CT: control target
= control target key end

     0   :  { %s3985_s12 = smov 0   ;;  %s4869_s0 = inlined_call_operand.vmem [shape: bf16[2,18,18,3], index: 0, kind: input, shape index: {}]   ;;  %s4870_s1 = inlined_call_operand.vmem [shape: bf16[9,3,128], index: 1, kind: input, shape index: {}]   ;;  %s4871_s2 = inlined_call_operand.vmem [shape: f32[1,128], index: 2, kind: input, shape index: {}]   ;;  %s4872_s3 = inlined_call_operand.vmem [shape: bf16[2,1,128], index: 3, kind: output, shape index: {}]  }
   0x1 LB: > { %s2989_s13 = sadd.s32 4294967295, %s3962_s12   ;;  %p2993_p0 = scmp.ge.s32.totalorder %s3962_s12, 1  ;;  %s3962_s12 = sphi %s3985_s12, %s13_s12  }
   0x2   : > { %p137_p1 = scmp.lt.s32.totalorder %s3962_s12, 3 }
   0x4   : > { %p138_p2 = pnand %p2993_p0, %p137_p1 }
   0x6   : > { %141 = sbr.rel (%p138_p2) target bundleno = 562 (0x232), region = 32 }
   0xd   : > { %v3003_v0 = vld [vmem:[%s4870_s1 + $0x2] sm:$0x3]  ;;  %vm402_vm0 = vcmask 1040384   ;;  %vm403_vm1 = vcmask 1041408   ;;  %p159_p3 = scmp.lt.s32.totalorder %s2989_s13, 1  ;;  %v3964_v1 = vmov 65535  }
   0xe   : > { %v404_v2 = vsel %vm402_vm0, 4294967295, %v3964_v1  ;;  %v285_v3 = vld [vmem:[%s4870_s1] sm:$0x3]  ;;  %vm310_vm2 = vcmask 1046528   ;;  %vm377_vm3 = vcmask 23552   ;;  %vm630_vm4 = vcmask 1045504  }
   0xf   : > { %v4000_v4 = vsel %vm403_vm1, %v404_v2, 0  ;;  %s4975_s13 = smov (!%p159_p3, %s2989_s13), 1  ;;  %v3020_v26 = vld [vmem:[%s4870_s1 + $0x4] sm:$0x3]  ;;  %v3030_v32 = vld [vmem:[%s4870_s1 + $0x6] sm:$0x3] }
  0x10   : > { %v407_v5 = vand.u32 %v3003_v0, %v4000_v4  ;;  %v4006_v6 = vand.u32 %v4000_v4, %v285_v3  ;;  %s3910_s18 = smul.u32 216, %s4975_s13  ;;  %v4067_v40 = vand.u32 %v3020_v26, %v4000_v4  ;;  %v4076_v44 = vand.u32 %v3030_v32, %v4000_v4  ;;  %s166_s15 = scalar_lea.vmem %s4872_s3, %s4975_s13 }
  0x11   : > { %vm2937_vm5 = vsmask.f32 256 }
  0x12   : > { %3330 = vmatprep.subr.bf16.mxu0 %v407_v5  ;;  %3492 = vmatprep.subr.bf16.mxu1 %v407_v5  ;;  %s4012_s21 = scalar_lea.vmem %s4869_s0, %s3910_s18  ;;  %vm2938_vm6 = vmand %vm402_vm0, %vm2937_vm5 }
  0x13   : > { %3331 = vmatpush3.bf16.msra.mxu0 %v407_v5  ;;  %3493 = vmatpush3.bf16.msra.mxu1 %v407_v5  ;;  %v4015_v7 = vld [vmem:[%s4012_s21] sm:$0xff]   ;;  %v170_v8 = vld [vmem:[%s4012_s21 + $0x8] sm:$0x1]  ;;  %v4030_v15 = vld [vmem:[%s4012_s21 + $0xc] sm:$0xff]  }
  0x14   : > { %3348 = vmatprep.subr.bf16.mxu0 %v4006_v6  ;;  %v4020_v9 = vld [vmem:[%s4012_s21 + $0x60] sm:$0xff]   ;;  %3510 = vmatprep.subr.bf16.mxu1 %v4006_v6  ;;  %v222_v10 = vunpack.c.l.bf16 %v4015_v7  ;;  %v223_v11 = vunpack.c.h.bf16 %v4015_v7  ;;  %v224_v12 = vunpack.c.l.bf16 %v170_v8  ;;  %v4026_v13 = vld [vmem:[%s4012_s21 + $0x68] sm:$0x1]  ;;  %v4035_v18 = vld [vmem:[%s4012_s21 + $0x14] sm:$0x1]  ;;  %v225_v19 = vunpack.c.l.bf16 %v4030_v15 }
  0x15   : > { %v4899_v14 = vunpack.c.l.bf16 %v4020_v9  ;;  %v4898_v16 = vunpack.c.h.bf16 %v4020_v9  ;;  %v4896_v17 = vunpack.c.l.bf16 %v4026_v13  ;;  %v4908_v23 = vunpack.c.h.bf16 %v4030_v15  ;;  %v4052_v31 = vld [vmem:[%s4012_s21 + $0x6c] sm:$0xff]   ;;  %v4059_v36 = vld [vmem:[%s4012_s21 + $0x74] sm:$0x1]  ;;  %v4083_v49 = vld [vmem:[%s4012_s21 + $0x18] sm:$0xff]  }
  0x16   : > { %v311_v20 = vrot.slane %v222_v10, 1  ;;  %v312_v21 = vrot.slane %v223_v11, 1  ;;  %v314_v22 = vrot.slane %v224_v12, 1  ;;  %v4907_v30 = vunpack.c.l.bf16 %v4035_v18  ;;  %v4086_v50 = vld [vmem:[%s4012_s21 + $0x20] sm:$0x1]  ;;  %v4089_v51 = vld [vmem:[%s4012_s21 + $0x78] sm:$0xff]  }
  0x17   : > { %v962_v24 = vrot.slane %v4899_v14, 1  ;;  %v963_v25 = vrot.slane %v4898_v16, 1  ;;  %v965_v29 = vrot.slane %v4896_v17, 1  ;;  %v316_v35 = vrot.slane %v225_v19, 1  ;;  %v4102_v56 = vld [vmem:[%s4012_s21 + $0x80] sm:$0x1] }
  0x18   : > { %v313_v27 = vsel %vm310_vm2, %v311_v20, %v312_v21  ;;  %v315_v28 = vsel %vm310_vm2, %v312_v21, %v314_v22  ;;  %v317_v38 = vrot.slane %v4908_v23, 1  ;;  %v319_v39 = vrot.slane %v4907_v30, 1  ;;  %v4117_v0 = vld [vmem:[%s4012_s21 + $0x24] sm:$0xff]   ;;  %v4125_v8 = vld [vmem:[%s4012_s21 + $0x2c] sm:$0x1]  ;;  %v4286_v17 = vld [vmem:[%s4012_s21 + $0x54] sm:$0xff]  }
  0x19   : > { %v367_v33 = vpack.c.bf16 %v315_v28, %v313_v27  ;;  %v964_v34 = vsel %vm310_vm2, %v962_v24, %v963_v25  ;;  %v966_v37 = vsel %vm310_vm2, %v963_v25, %v965_v29  ;;  %v4070_v41 = vrot.slane %v222_v10, 2  ;;  %v4144_v25 = vld [vmem:[%s4012_s21 + $0x84] sm:$0xff]   ;;  %v4153_v32 = vld [vmem:[%s4012_s21 + $0x8c] sm:$0x1] }
  0x1a   : > { %v4072_v42 = vpack.c.bf16 %v966_v37, %v964_v34  ;;  %v4905_v43 = vunpack.c.l.bf16 %v4052_v31  ;;  %v318_v45 = vsel %vm310_vm2, %v316_v35, %v317_v38  ;;  %v320_v46 = vsel %vm310_vm2, %v317_v38, %v319_v39  ;;  %v4166_v39 = vld [vmem:[%s4012_s21 + $0x38] sm:$0x1] }
  0x1b   : > { %3332 = vmatprep.mubr.msk.bf16.mxu0 %vm377_vm3, %v367_v33  ;;  %v4901_v47 = vunpack.c.h.bf16 %v4052_v31  ;;  %v4900_v48 = vunpack.c.l.bf16 %v4059_v36  ;;  %v4091_v52 = vrot.slane %v223_v11, 2  ;;  %v4093_v53 = vrot.slane %v224_v12, 2  ;;  %v4156_v33 = vld [vmem:[%s4012_s21 + $0x30] sm:$0xff]  }
  0x1c   : > { %4923 = vst [vmem:[#allocation2_spill] sm:$0xff] %v4072_v42  ;;  %3494 = vmatprep.mubr.msk.bf16.mxu1 %vm377_vm3, %v4072_v42  ;;  %v4097_v54 = vpack.c.bf16 %v320_v46, %v318_v45  ;;  %v1345_v55 = vrot.slane %v4905_v43, 1  ;;  %v4104_v57 = vrot.slane %v225_v19, 2  ;;  %v4892_v60 = vunpack.c.l.bf16 %v4083_v49  ;;  %v4323_v43 = vld [vmem:[%s4012_s21 + $0xbc] sm:$0x1] }
  0x1d   : > { %v1346_v58 = vrot.slane %v4901_v47, 1  ;;  %v1348_v59 = vrot.slane %v4900_v48, 1  ;;  %v4890_v61 = vunpack.c.h.bf16 %v4083_v49  ;;  %v4889_v62 = vunpack.c.l.bf16 %v4086_v50  ;;  %v4296_v47 = vld [vmem:[%s4012_s21 + $0x5c] sm:$0x1] }
  0x1e   : > { %3333 = vmatmul.mubr.msk.bf16.vlgmr.msra.gmra.mrb[0].mxu0 %vm377_vm3, %v4097_v54  ;;  %v4888_v63 = vunpack.c.l.bf16 %v4089_v51  ;;  %v4886_v3 = vunpack.c.h.bf16 %v4089_v51  ;;  %v4882_v5 = vunpack.c.l.bf16 %v4102_v56  ;;  %v321_v11 = vrot.slane %v4892_v60, 1 }
  0x1f   : > { %3349 = vmatpush3.bf16.msra.mxu0 %v4006_v6  ;;  %v1347_v1 = vsel %vm310_vm2, %v1345_v55, %v1346_v58  ;;  %v1349_v2 = vsel %vm310_vm2, %v1346_v58, %v1348_v59  ;;  %v322_v12 = vrot.slane %v4890_v61, 1  ;;  %v324_v19 = vrot.slane %v4889_v62, 1 }
  0x20   : > { %v4127_v10 = vpack.c.bf16 %v1349_v2, %v1347_v1  ;;  %3366 = vmatprep.subr.bf16.mxu0 %v4067_v40  ;;  %v1687_v20 = vrot.slane %v4888_v63, 1  ;;  %v1688_v21 = vrot.slane %v4886_v3, 1  ;;  %v1690_v22 = vrot.slane %v4882_v5, 1  ;;  %v4231_v5 = vld [vmem:[%s4012_s21 + $0xa4] sm:$0x1]  ;;  %v4261_v63 = vld [vmem:[%s4012_s21 + $0xa8] sm:$0xff]  }
  0x21   : > { %v4881_v24 = vunpack.c.l.bf16 %v4117_v0  ;;  %v323_v26 = vsel %vm310_vm2, %v321_v11, %v322_v12  ;;  %v325_v27 = vsel %vm310_vm2, %v322_v12, %v324_v19  ;;  %v4880_v28 = vunpack.c.h.bf16 %v4117_v0  ;;  %v4183_v11 = vld [vmem:[%s4012_s21 + $0x90] sm:$0xff]  }
  0x22   : > { %3495 = vmatmul.mubr.msk.bf16.vlgmr.msra.gmra.mrb[0].mxu1 %vm377_vm3, %v4127_v10  ;;  %v4878_v29 = vunpack.c.l.bf16 %v4125_v8  ;;  %v4159_v34 = vpack.c.bf16 %v325_v27, %v323_v26  ;;  %v1689_v35 = vsel %vm310_vm2, %v1687_v20, %v1688_v21  ;;  %v1691_v37 = vsel %vm310_vm2, %v1688_v21, %v1690_v22  ;;  %v4193_v22 = vld [vmem:[%s4012_s21 + $0x98] sm:$0x1]  ;;  %v4196_v26 = vld [vmem:[%s4012_s21 + $0x3c] sm:$0xff]  }
  0x23   : > { %3511 = vmatpush3.bf16.msra.mxu1 %v4006_v6  ;;  %v326_v38 = vrot.slane %v4881_v24, 1  ;;  %v4168_v45 = vpack.c.bf16 %v1691_v37, %v1689_v35  ;;  %v327_v46 = vrot.slane %v4880_v28, 1  ;;  %v4873_v55 = vunpack.c.l.bf16 %v4144_v25 }
  0x24   : > { %v329_v6 = vrot.slane %v4878_v29, 1  ;;  %3528 = vmatprep.subr.bf16.mxu1 %v4067_v40  ;;  %3336 = vmatprep.mubr.msk.bf16.mxu0 %vm377_vm3, %v4159_v34  ;;  %v4876_v58 = vunpack.c.h.bf16 %v4144_v25  ;;  %v4874_v59 = vunpack.c.l.bf16 %v4153_v32  ;;  %v4875_v1 = vunpack.c.l.bf16 %v4156_v33  ;;  %v4222_v29 = vld [vmem:[%s4012_s21 + $0x9c] sm:$0xff]  }
  0x25   : > { %v4877_v2 = vunpack.c.h.bf16 %v4156_v33  ;;  %3498 = vmatprep.mubr.msk.bf16.mxu1 %vm377_vm3, %v4168_v45  ;;  %v328_v12 = vsel %vm310_vm2, %v326_v38, %v327_v46  ;;  %v1692_v20 = vrot.slane %v4873_v55, 1  ;;  %v4879_v21 = vunpack.c.l.bf16 %v4166_v39 }
  0x26   : > { %v330_v19 = vsel %vm310_vm2, %v327_v46, %v329_v6  ;;  %v1693_v35 = vrot.slane %v4876_v58, 1  ;;  %v1695_v37 = vrot.slane %v4874_v59, 1  ;;  %v331_v38 = vrot.slane %v4875_v1, 1  ;;  %v4218_v58 = vld [vmem:[%s4012_s21 + $0x44] sm:$0x1] }
  0x27   : > { %v4198_v27 = vpack.c.bf16 %v330_v19, %v328_v12  ;;  %v332_v46 = vrot.slane %v4877_v2, 1  ;;  %v334_v6 = vrot.slane %v4879_v21, 1  ;;  %v4885_v55 = vunpack.c.l.bf16 %v4183_v11 }
  0x28   : > { %v4884_v12 = vunpack.c.h.bf16 %v4183_v11  ;;  %v1694_v19 = vsel %vm310_vm2, %v1692_v20, %v1693_v35  ;;  %v1696_v59 = vsel %vm310_vm2, %v1693_v35, %v1695_v37  ;;  %v4883_v1 = vunpack.c.l.bf16 %v4193_v22 }
  0x29   : > { %3337 = vmatmul.mubr.msk.bf16.gmra.mrb[4].mxu0 %vm377_vm3, %v4198_v27  ;;  %v4887_v2 = vunpack.c.l.bf16 %v4196_v26  ;;  %v4224_v21 = vpack.c.bf16 %v1696_v59, %v1694_v19  ;;  %v333_v28 = vsel %vm310_vm2, %v331_v38, %v332_v46  ;;  %v335_v24 = vsel %vm310_vm2, %v332_v46, %v334_v6  ;;  %v4248_v6 = vld [vmem:[%s4012_s21 + $0x48] sm:$0xff]  }
  0x2a   : > { %v1697_v20 = vrot.slane %v4885_v55, 1  ;;  %v4233_v35 = vpack.c.bf16 %v335_v24, %v333_v28  ;;  %v1698_v37 = vrot.slane %v4884_v12, 1  ;;  %v1700_v59 = vrot.slane %v4883_v1, 1 }
  0x2b   : > { %v4891_v19 = vunpack.c.h.bf16 %v4196_v26  ;;  %3499 = vmatmul.mubr.msk.bf16.gmra.mrb[4].mxu1 %vm377_vm3, %v4224_v21  ;;  %v4895_v38 = vunpack.c.l.bf16 %v4218_v58  ;;  %v336_v46 = vrot.slane %v4887_v2, 1  ;;  %v4893_v24 = vunpack.c.l.bf16 %v4222_v29  ;;  %v4258_v2 = vld [vmem:[%s4012_s21 + $0x50] sm:$0x1] }
  0x2c   : > { %v4894_v28 = vunpack.c.h.bf16 %v4222_v29  ;;  %3340 = vmatprep.mubr.msk.bf16.mxu0 %vm377_vm3, %v4233_v35  ;;  %v1699_v1 = vsel %vm310_vm2, %v1697_v20, %v1698_v37  ;;  %v1701_v12 = vsel %vm310_vm2, %v1698_v37, %v1700_v59  ;;  %v4897_v3 = vunpack.c.l.bf16 %v4231_v5 }
  0x2d   : > { %v337_v55 = vrot.slane %v4891_v19, 1  ;;  %v4263_v62 = vpack.c.bf16 %v1701_v12, %v1699_v1  ;;  %v339_v61 = vrot.slane %v4895_v38, 1  ;;  %v1702_v20 = vrot.slane %v4893_v24, 1  ;;  %v4277_v12 = vld [vmem:[%s4012_s21 + $0xb0] sm:$0x1] }
  0x2e   : > { %v1703_v37 = vrot.slane %v4894_v28, 1  ;;  %v1705_v19 = vrot.slane %v4897_v3, 1  ;;  %v4904_v60 = vunpack.c.l.bf16 %v4248_v6  ;;  %v4903_v1 = vunpack.c.h.bf16 %v4248_v6 }
  0x2f   : > { %v338_v59 = vsel %vm310_vm2, %v336_v46, %v337_v55  ;;  %3502 = vmatprep.mubr.msk.bf16.mxu1 %vm377_vm3, %v4263_v62  ;;  %v340_v24 = vsel %vm310_vm2, %v337_v55, %v339_v61  ;;  %v4902_v38 = vunpack.c.l.bf16 %v4258_v2  ;;  %v4906_v46 = vunpack.c.l.bf16 %v4261_v63 }
  0x30   : > { %v1704_v28 = vsel %vm310_vm2, %v1702_v20, %v1703_v37  ;;  %v4288_v3 = vpack.c.bf16 %v340_v24, %v338_v59  ;;  %v1706_v16 = vsel %vm310_vm2, %v1703_v37, %v1705_v19  ;;  %v341_v14 = vrot.slane %v4904_v60, 1  ;;  %v4305_v59 = vld [vmem:[%s4012_s21 + $0xb4] sm:$0xff]  }
  0x31   : > { %v342_v48 = vrot.slane %v4903_v1, 1  ;;  %v4298_v61 = vpack.c.bf16 %v1706_v16, %v1704_v28  ;;  %v344_v55 = vrot.slane %v4902_v38, 1  ;;  %v4909_v20 = vunpack.c.h.bf16 %v4261_v63 }
  0x32   : > { %v4910_v24 = vunpack.c.l.bf16 %v4277_v12  ;;  %3341 = vmatmul.mubr.msk.bf16.gmra.mrb[8].mxu0 %vm377_vm3, %v4288_v3  ;;  %v1707_v16 = vrot.slane %v4906_v46, 1  ;;  %v4914_v28 = vunpack.c.l.bf16 %v4286_v17  ;;  %v4913_v37 = vunpack.c.h.bf16 %v4286_v17 }
  0x33   : > { %4924 = vst [vmem:[#allocation3_spill] sm:$0xff] %v4298_v61  ;;  %v343_v19 = vsel %vm310_vm2, %v341_v14, %v342_v48  ;;  %3503 = vmatmul.mubr.msk.bf16.gmra.mrb[8].mxu1 %vm377_vm3, %v4298_v61  ;;  %v345_v38 = vsel %vm310_vm2, %v342_v48, %v344_v55  ;;  %v1708_v1 = vrot.slane %v4909_v20, 1  ;;  %v4915_v14 = vunpack.c.l.bf16 %v4296_v47 }
  0x34   : > { %v1710_v60 = vrot.slane %v4910_v24, 1  ;;  %v4325_v46 = vpack.c.bf16 %v345_v38, %v343_v19  ;;  %v346_v30 = vrot.slane %v4914_v28, 1  ;;  %v347_v23 = vrot.slane %v4913_v37, 1 }
  0x35   : > { %v4920_v48 = vunpack.c.l.bf16 %v4305_v59  ;;  %v1709_v55 = vsel %vm310_vm2, %v1707_v16, %v1708_v1  ;;  %v349_v24 = vrot.slane %v4915_v14, 1  ;;  %v4921_v42 = vunpack.c.h.bf16 %v4305_v59 }
  0x36   : > { %4925 = vst [vmem:[#allocation4_spill] sm:$0xff] %v4325_v46  ;;  %v1711_v20 = vsel %vm310_vm2, %v1708_v1, %v1710_v60  ;;  %3344 = vmatprep.mubr.msk.bf16.mxu0 %vm377_vm3, %v4325_v46  ;;  %v348_v19 = vsel %vm310_vm2, %v346_v30, %v347_v23  ;;  %v4922_v37 = vunpack.c.l.bf16 %v4323_v43  ;;  %v4926_v16 = vunpack.c.h.bf16 %v4030_v15 }
  0x37   : > { %v4339_v38 = vpack.c.bf16 %v1711_v20, %v1709_v55  ;;  %v1712_v28 = vrot.slane %v4920_v48, 1  ;;  %v350_v1 = vsel %vm310_vm2, %v347_v23, %v349_v24  ;;  %v1713_v14 = vrot.slane %v4921_v42, 1 }
  0x38   : > { %v637_v60 = vrot.slane %v4926_v16, 2  ;;  %v4927_v61 = vunpack.c.l.bf16 %v4035_v18  ;;  %v4354_v30 = vpack.c.bf16 %v350_v1, %v348_v19  ;;  %v1715_v20 = vrot.slane %v4922_v37, 1 }
  0x39   : > { %3506 = vmatprep.mubr.msk.bf16.mxu1 %vm377_vm3, %v4339_v38  ;;  %v4928_v55 = vunpack.c.l.bf16 %v4052_v31  ;;  %v4929_v16 = vunpack.c.h.bf16 %v4052_v31  ;;  %v4930_v24 = vunpack.c.l.bf16 %v4059_v36  ;;  %v1714_v18 = vsel %vm310_vm2, %v1712_v28, %v1713_v14 }
  0x3a   : > { %v639_v46 = vrot.slane %v4927_v61, 2  ;;  %3345 = vmatmul.mubr.msk.bf16.gmra.mrb[12].mxu0 %vm377_vm3, %v4354_v30  ;;  %v1716_v61 = vsel %vm310_vm2, %v1713_v14, %v1715_v20  ;;  %v4375_v1 = vsel %vm630_vm4, %v4070_v41, %v4091_v52  ;;  %v4380_v36 = vsel %vm630_vm4, %v4091_v52, %v4093_v53 }
  0x3b   : > { %v1474_v48 = vrot.slane %v4928_v55, 2  ;;  %v1475_v23 = vrot.slane %v4929_v16, 2  ;;  %v1477_v42 = vrot.slane %v4930_v24, 2  ;;  %v4368_v19 = vpack.c.bf16 %v1716_v61, %v1714_v18  ;;  %3350 = vmatprep.mubr.msk.bf16.mxu0 %vm377_vm3, %v4015_v7 }
  0x3c   : > { %v4931_v28 = vunpack.c.l.bf16 %v4020_v9  ;;  %v4932_v7 = vunpack.c.h.bf16 %v4020_v9  ;;  %v4933_v41 = vunpack.c.l.bf16 %v4026_v13  ;;  %v638_v24 = vsel %vm630_vm4, %v4104_v57, %v637_v60 }
  0x3d   : > { %3507 = vmatmul.mubr.msk.bf16.gmra.mrb[12].mxu1 %vm377_vm3, %v4368_v19  ;;  %v640_v52 = vsel %vm630_vm4, %v637_v60, %v639_v46  ;;  %v1476_v53 = vsel %vm630_vm4, %v1474_v48, %v1475_v23  ;;  %v1478_v18 = vsel %vm630_vm4, %v1475_v23, %v1477_v42  ;;  %v4934_v61 = vunpack.c.l.bf16 %v4083_v49 }
  0x3e   : > { %v1091_v55 = vrot.slane %v4931_v28, 2  ;;  %v1092_v20 = vrot.slane %v4932_v7, 2  ;;  %v1094_v16 = vrot.slane %v4933_v41, 2  ;;  %3512 = vmatprep.mubr.msk.bf16.mxu1 %vm377_vm3, %v4020_v9  ;;  %v4403_v41 = vpack.c.bf16 %v640_v52, %v638_v24 }
  0x3f   : > { %v641_v28 = vrot.slane %v4934_v61, 2  ;;  %v4405_v14 = vpack.c.bf16 %v1478_v18, %v1476_v53  ;;  %v4935_v37 = vunpack.c.h.bf16 %v4083_v49  ;;  %v4936_v48 = vunpack.c.l.bf16 %v4086_v50 }
  0x40   : > { %v1093_v7 = vsel %vm630_vm4, %v1091_v55, %v1092_v20  ;;  %v1095_v13 = vsel %vm630_vm4, %v1092_v20, %v1094_v16  ;;  %v4937_v42 = vunpack.c.l.bf16 %v4089_v51  ;;  %v4938_v61 = vunpack.c.h.bf16 %v4089_v51 }
  0x41   : > { %v4407_v57 = vpack.c.bf16 %v1095_v13, %v1093_v7  ;;  %v642_v46 = vrot.slane %v4935_v37, 2  ;;  %v644_v60 = vrot.slane %v4936_v48, 2  ;;  %v4939_v20 = vunpack.c.l.bf16 %v4102_v56 }
  0x42   : > { %v1965_v23 = vrot.slane %v4937_v42, 2  ;;  %v1966_v55 = vrot.slane %v4938_v61, 2  ;;  %v4940_v24 = vunpack.c.l.bf16 %v4117_v0  ;;  %v4941_v53 = vunpack.c.h.bf16 %v4117_v0  ;;  %3351 = vmatmul.mubr.msk.bf16.vlgmr.msra.gmra.mrb[0].mxu0 %vm377_vm3, %v4030_v15 }
  0x43   : > { %v1968_v16 = vrot.slane %v4939_v20, 2  ;;  %v643_v50 = vsel %vm630_vm4, %v641_v28, %v642_v46  ;;  %v645_v37 = vsel %vm630_vm4, %v642_v46, %v644_v60  ;;  %v4942_v7 = vunpack.c.l.bf16 %v4125_v8  ;;  %3367 = vmatpush3.bf16.msra.mxu0 %v4067_v40  ;;  %3354 = vmatprep.mubr.msk.bf16.mxu0 %vm377_vm3, %v4083_v49 }
  0x44   : > { %v646_v52 = vrot.slane %v4940_v24, 2  ;;  %v647_v18 = vrot.slane %v4941_v53, 2  ;;  %v4943_v48 = vunpack.c.l.bf16 %v4144_v25  ;;  %v4434_v42 = vpack.c.bf16 %v645_v37, %v643_v50  ;;  %3384 = vmatprep.subr.bf16.mxu0 %v4076_v44 }
  0x45   : > { %v649_v13 = vrot.slane %v4942_v7, 2  ;;  %v1967_v61 = vsel %vm630_vm4, %v1965_v23, %v1966_v55  ;;  %v1969_v20 = vsel %vm630_vm4, %v1966_v55, %v1968_v16  ;;  %v4944_v28 = vunpack.c.h.bf16 %v4144_v25  ;;  %3513 = vmatmul.mubr.msk.bf16.vlgmr.msra.gmra.mrb[0].mxu1 %vm377_vm3, %v4052_v31 }
  0x46   : > { %v1970_v56 = vrot.slane %v4943_v48, 2  ;;  %v4441_v8 = vpack.c.bf16 %v1969_v20, %v1967_v61  ;;  %v648_v60 = vsel %vm630_vm4, %v646_v52, %v647_v18  ;;  %v4945_v53 = vunpack.c.l.bf16 %v4153_v32  ;;  %3529 = vmatpush3.bf16.msra.mxu1 %v4067_v40  ;;  %3516 = vmatprep.mubr.msk.bf16.mxu1 %vm377_vm3, %v4089_v51 }
  0x47   : > { %v1971_v46 = vrot.slane %v4944_v28, 2  ;;  %v650_v24 = vsel %vm630_vm4, %v647_v18, %v649_v13  ;;  %v4946_v16 = vunpack.c.l.bf16 %v4156_v33  ;;  %v4947_v37 = vunpack.c.h.bf16 %v4156_v33  ;;  %3546 = vmatprep.subr.bf16.mxu1 %v4076_v44 }
  0x48   : > { %v1973_v7 = vrot.slane %v4945_v53, 2  ;;  %v4449_v23 = vpack.c.bf16 %v650_v24, %v648_v60  ;;  %v4948_v52 = vunpack.c.l.bf16 %v4166_v39  ;;  %v4949_v13 = vunpack.c.l.bf16 %v4183_v11 }
  0x49   : > { %v1972_v55 = vsel %vm630_vm4, %v1970_v56, %v1971_v46  ;;  %v651_v50 = vrot.slane %v4946_v16, 2  ;;  %v652_v48 = vrot.slane %v4947_v37, 2  ;;  %v4950_v56 = vunpack.c.h.bf16 %v4183_v11 }
  0x4a   : > { %v1974_v32 = vsel %vm630_vm4, %v1971_v46, %v1973_v7  ;;  %v654_v18 = vrot.slane %v4948_v52, 2  ;;  %v1975_v61 = vrot.slane %v4949_v13, 2  ;;  %v4951_v60 = vunpack.c.l.bf16 %v4193_v22  ;;  %3355 = vmatmul.mubr.msk.bf16.gmra.mrb[4].mxu0 %vm377_vm3, %v4117_v0 }
  0x4b   : > { %v1976_v20 = vrot.slane %v4950_v56, 2  ;;  %v4467_v28 = vpack.c.bf16 %v1974_v32, %v1972_v55  ;;  %v653_v40 = vsel %vm630_vm4, %v651_v50, %v652_v48  ;;  %v4952_v46 = vunpack.c.l.bf16 %v4196_v26  ;;  %3358 = vmatprep.mubr.msk.bf16.mxu0 %vm377_vm3, %v4156_v33 }
  0x4c   : > { %v1978_v24 = vrot.slane %v4951_v60, 2  ;;  %v655_v39 = vsel %vm630_vm4, %v652_v48, %v654_v18  ;;  %v4953_v16 = vunpack.c.h.bf16 %v4196_v26  ;;  %v4954_v52 = vunpack.c.l.bf16 %v4218_v58 }
  0x4d   : > { %v656_v53 = vrot.slane %v4952_v46, 2  ;;  %v1977_v7 = vsel %vm630_vm4, %v1975_v61, %v1976_v20  ;;  %v4480_v55 = vpack.c.bf16 %v655_v39, %v653_v40  ;;  %v4955_v22 = vunpack.c.l.bf16 %v4222_v29  ;;  %3517 = vmatmul.mubr.msk.bf16.gmra.mrb[4].mxu1 %vm377_vm3, %v4144_v25 }
  0x4e   : > { %v657_v37 = vrot.slane %v4953_v16, 2  ;;  %v659_v13 = vrot.slane %v4954_v52, 2  ;;  %v1979_v50 = vsel %vm630_vm4, %v1976_v20, %v1978_v24  ;;  %v4956_v56 = vunpack.c.h.bf16 %v4222_v29  ;;  %3520 = vmatprep.mubr.msk.bf16.mxu1 %vm377_vm3, %v4183_v11 }
  0x4f   : > { %v1980_v32 = vrot.slane %v4955_v22, 2  ;;  %v4489_v48 = vpack.c.bf16 %v1979_v50, %v1977_v7  ;;  %v4957_v61 = vunpack.c.l.bf16 %v4231_v5  ;;  %v4959_v5 = vunpack.c.h.bf16 %v4286_v17 }
  0x50   : > { %v1981_v60 = vrot.slane %v4956_v56, 2  ;;  %v658_v18 = vsel %vm630_vm4, %v656_v53, %v657_v37  ;;  %v660_v58 = vsel %vm630_vm4, %v657_v37, %v659_v13  ;;  %v4958_v53 = vunpack.c.l.bf16 %v4286_v17 }
  0x51   : > { %v1983_v40 = vrot.slane %v4957_v61, 2  ;;  %v4497_v20 = vpack.c.bf16 %v660_v58, %v658_v18  ;;  %v667_v16 = vrot.slane %v4959_v5, 2  ;;  %v4960_v37 = vunpack.c.l.bf16 %v4296_v47 }
  0x52   : > { %v1982_v24 = vsel %vm630_vm4, %v1980_v32, %v1981_v60  ;;  %v666_v7 = vrot.slane %v4958_v53, 2  ;;  %v4961_v13 = vunpack.c.l.bf16 %v4305_v59  ;;  %v4962_v22 = vunpack.c.h.bf16 %v4305_v59  ;;  %3359 = vmatmul.mubr.msk.bf16.gmra.mrb[8].mxu0 %vm377_vm3, %v4196_v26 }
  0x53   : > { %v1984_v46 = vsel %vm630_vm4, %v1981_v60, %v1983_v40  ;;  %v669_v52 = vrot.slane %v4960_v37, 2  ;;  %v4963_v18 = vunpack.c.l.bf16 %v4323_v43  ;;  %3362 = vmatprep.mubr.msk.bf16.mxu0 %vm377_vm3, %v4248_v6  ;;  %v4964_v43 = vpack.c.bf16 %v4380_v36, %v4375_v1 }
  0x54   : > { %v4503_v39 = vpack.c.bf16 %v1984_v46, %v1982_v24  ;;  %v1990_v50 = vrot.slane %v4961_v13, 2  ;;  %v1991_v32 = vrot.slane %v4962_v22, 2  ;;  %v668_v56 = vsel %vm630_vm4, %v666_v7, %v667_v16  ;;  %v3039_v46 = vld [vmem:[%s4870_s1 + $0x8] sm:$0x3] }
  0x55   : > { %v670_v60 = vsel %vm630_vm4, %v667_v16, %v669_v52  ;;  %v1993_v58 = vrot.slane %v4963_v18, 2  ;;  %3521 = vmatmul.mubr.msk.bf16.gmra.mrb[8].mxu1 %vm377_vm3, %v4222_v29  ;;  %v976_v53 = vand.u32 %v3039_v46, %v4000_v4  ;;  %v4965_v1 = vunpack.c.l.bf16 %v4248_v6 }
  0x56   : > { %v4521_v61 = vpack.c.bf16 %v670_v60, %v668_v56  ;;  %v1992_v40 = vsel %vm630_vm4, %v1990_v50, %v1991_v32  ;;  %3524 = vmatprep.mubr.msk.bf16.mxu1 %vm377_vm3, %v4261_v63  ;;  %v4966_v7 = vunpack.c.h.bf16 %v4248_v6  ;;  %v4967_v16 = vunpack.c.l.bf16 %v4258_v2 }
  0x57   : > { %v1994_v47 = vsel %vm630_vm4, %v1991_v32, %v1993_v58  ;;  %v661_v36 = vrot.slane %v4965_v1, 2  ;;  %v4969_v13 = vunpack.c.h.bf16 %v4261_v63  ;;  %v4970_v22 = vunpack.c.l.bf16 %v4277_v12 }
  0x58   : > { %v4529_v24 = vpack.c.bf16 %v1994_v47, %v1992_v40  ;;  %v662_v5 = vrot.slane %v4966_v7, 2  ;;  %v664_v37 = vrot.slane %v4967_v16, 2  ;;  %v3048_v40 = vld [vmem:[%s4870_s1 + $0xa] sm:$0x3] }
  0x59   : > { %v1986_v50 = vrot.slane %v4969_v13, 2  ;;  %v1988_v32 = vrot.slane %v4970_v22, 2  ;;  %v1105_v47 = vand.u32 %v3048_v40, %v4000_v4  ;;  %v4973_v22 = vld [vmem:[#allocation2_spill] sm:$0xff] }
  0x5a   : > { %3363 = vmatmul.mubr.msk.bf16.gmra.mrb[12].mxu0 %vm377_vm3, %v4286_v17  ;;  %v663_v56 = vsel %vm630_vm4, %v661_v36, %v662_v5  ;;  %v665_v2 = vsel %vm630_vm4, %v662_v5, %v664_v37  ;;  %v4971_v36 = vld [vmem:[#allocation3_spill] sm:$0xff]  ;;  %v4972_v37 = vld [vmem:[#allocation4_spill] sm:$0xff] }
  0x5b   : > { %3368 = vmatprep.mubr.msk.bf16.mxu0 %vm377_vm3, %v4964_v43  ;;  %v4581_v60 = vpack.c.bf16 %v665_v2, %v663_v56  ;;  %v1989_v58 = vsel %vm630_vm4, %v1986_v50, %v1988_v32  ;;  %v3058_v43 = vld [vmem:[%s4870_s1 + $0xc] sm:$0x3]  ;;  %v3067_v32 = vld [vmem:[%s4870_s1 + $0xe] sm:$0x3] }
  0x5c   : > { %v1227_v46 = vand.u32 %v3058_v43, %v4000_v4  ;;  %v1359_v56 = vand.u32 %v3067_v32, %v4000_v4  ;;  %v3076_v43 = vld [vmem:[%s4870_s1 + $0x10] sm:$0x3] }
  0x5d   : > { %3525 = vmatmul.mubr.msk.bf16.gmra.mrb[12].mxu1 %vm377_vm3, %v4305_v59 }
  0x5e   : > { %3530 = vmatprep.mubr.msk.bf16.mxu1 %vm377_vm3, %v4407_v57 }
  0x62   : > { %3369 = vmatmul.mubr.msk.bf16.vlgmr.msra.gmra.mrb[0].mxu0 %vm377_vm3, %v4403_v41 }
  0x63   : > { %3385 = vmatpush3.bf16.msra.mxu0 %v4076_v44  ;;  %3372 = vmatprep.mubr.msk.bf16.mxu0 %vm377_vm3, %v4434_v42 }
  0x64   : > { %3402 = vmatprep.subr.bf16.mxu0 %v976_v53 }
  0x65   : > { %3531 = vmatmul.mubr.msk.bf16.vlgmr.msra.gmra.mrb[0].mxu1 %vm377_vm3, %v4405_v14 }
  0x66   : > { %3547 = vmatpush3.bf16.msra.mxu1 %v4076_v44  ;;  %3534 = vmatprep.mubr.msk.bf16.mxu1 %vm377_vm3, %v4441_v8  ;;  %v4968_v44 = vunpack.c.l.bf16 %v4261_v63 }
  0x67   : > { %3564 = vmatprep.subr.bf16.mxu1 %v976_v53 }
  0x68   : > { %v1985_v52 = vrot.slane %v4968_v44, 2 }
  0x6a   : > { %3373 = vmatmul.mubr.msk.bf16.gmra.mrb[4].mxu0 %vm377_vm3, %v4449_v23  ;;  %v1987_v18 = vsel %vm630_vm4, %v1985_v52, %v1986_v50 }
  0x6b   : > { %3376 = vmatprep.mubr.msk.bf16.mxu0 %vm377_vm3, %v4480_v55  ;;  %v4587_v12 = vpack.c.bf16 %v1989_v58, %v1987_v18 }
  0x6d   : > { %3535 = vmatmul.mubr.msk.bf16.gmra.mrb[4].mxu1 %vm377_vm3, %v4467_v28 }
  0x6e   : > { %3538 = vmatprep.mubr.msk.bf16.mxu1 %vm377_vm3, %v4489_v48 }
  0x72   : > { %3377 = vmatmul.mubr.msk.bf16.gmra.mrb[8].mxu0 %vm377_vm3, %v4497_v20 }
  0x73   : > { %3380 = vmatprep.mubr.msk.bf16.mxu0 %vm377_vm3, %v4581_v60 }
  0x75   : > { %3539 = vmatmul.mubr.msk.bf16.gmra.mrb[8].mxu1 %vm377_vm3, %v4503_v39 }
  0x76   : > { %3542 = vmatprep.mubr.msk.bf16.mxu1 %vm377_vm3, %v4587_v12 }
  0x7a   : > { %3381 = vmatmul.mubr.msk.bf16.gmra.mrb[12].mxu0 %vm377_vm3, %v4521_v61 }
  0x7b   : > { %3386 = vmatprep.mubr.msk.bf16.mxu0 %vm377_vm3, %v4030_v15  ;;  %v4632_v15 = vld [vmem:[%s4012_s21 + $0xc0] sm:$0xff]  }
  0x7c   : > { %v271_v1 = vunpack.c.h.bf16 %v4632_v15 }
  0x7d   : > { %3543 = vmatmul.mubr.msk.bf16.gmra.mrb[12].mxu1 %vm377_vm3, %v4529_v24 }
  0x7e   : > { %3548 = vmatprep.mubr.msk.bf16.mxu1 %vm377_vm3, %v4052_v31  ;;  %v2265_v16 = vrot.slane %v271_v1, 1  ;;  %v2389_v2 = vrot.slane %v271_v1, 2 }
  0x82   : > { %3387 = vmatmul.mubr.msk.bf16.vlgmr.msra.gmra.mrb[0].mxu0 %vm377_vm3, %v4083_v49 }
  0x83   : > { %3403 = vmatpush3.bf16.msra.mxu0 %v976_v53  ;;  %3390 = vmatprep.mubr.msk.bf16.mxu0 %vm377_vm3, %v4117_v0 }
  0x84   : > { %3420 = vmatprep.subr.bf16.mxu0 %v1105_v47 }
  0x85   : > { %3549 = vmatmul.mubr.msk.bf16.vlgmr.msra.gmra.mrb[0].mxu1 %vm377_vm3, %v4089_v51 }
  0x86   : > { %3565 = vmatpush3.bf16.msra.mxu1 %v976_v53  ;;  %3552 = vmatprep.mubr.msk.bf16.mxu1 %vm377_vm3, %v4144_v25  ;;  %v270_v53 = vunpack.c.l.bf16 %v4632_v15 }
  0x87   : > { %3582 = vmatprep.subr.bf16.mxu1 %v1105_v47 }
  0x88   : > { %v2264_v5 = vrot.slane %v270_v53, 1 }
  0x8a   : > { %3391 = vmatmul.mubr.msk.bf16.gmra.mrb[4].mxu0 %vm377_vm3, %v4156_v33  ;;  %v2266_v52 = vsel %vm310_vm2, %v2264_v5, %v2265_v16 }
  0x8b   : > { %3394 = vmatprep.mubr.msk.bf16.mxu0 %vm377_vm3, %v4196_v26 }
  0x8d   : > { %3553 = vmatmul.mubr.msk.bf16.gmra.mrb[4].mxu1 %vm377_vm3, %v4183_v11 }
  0x8e   : > { %3556 = vmatprep.mubr.msk.bf16.mxu1 %vm377_vm3, %v4222_v29 }
  0x92   : > { %3395 = vmatmul.mubr.msk.bf16.gmra.mrb[8].mxu0 %vm377_vm3, %v4248_v6 }
  0x93   : > { %3398 = vmatprep.mubr.msk.bf16.mxu0 %vm377_vm3, %v4286_v17 }
  0x95   : > { %3557 = vmatmul.mubr.msk.bf16.gmra.mrb[8].mxu1 %vm377_vm3, %v4261_v63 }
  0x96   : > { %3560 = vmatprep.mubr.msk.bf16.mxu1 %vm377_vm3, %v4305_v59 }
  0x9a   : > { %3399 = vmatmul.mubr.msk.bf16.gmra.mrb[12].mxu0 %vm377_vm3, %v4020_v9 }
  0x9b   : > { %3404 = vmatprep.mubr.msk.bf16.mxu0 %vm377_vm3, %v4097_v54  ;;  %v218_v54 = vld [vmem:[%s4012_s21 + $0xc8] sm:$0x1] }
  0x9c   : > { %v272_v7 = vunpack.c.l.bf16 %v218_v54 }
  0x9d   : > { %3561 = vmatmul.mubr.msk.bf16.gmra.mrb[12].mxu1 %vm377_vm3, %v4632_v15 }
  0x9e   : > { %3566 = vmatprep.mubr.msk.bf16.mxu1 %vm377_vm3, %v4127_v10  ;;  %v2267_v44 = vrot.slane %v272_v7, 1  ;;  %v2391_v18 = vrot.slane %v272_v7, 2 }
  0xa0   : > { %v2268_v13 = vsel %vm310_vm2, %v2265_v16, %v2267_v44  ;;  %v2392_v40 = vsel %vm630_vm4, %v2389_v2, %v2391_v18 }
  0xa1   : > { %v4675_v50 = vpack.c.bf16 %v2268_v13, %v2266_v52 }
  0xa2   : > { %3405 = vmatmul.mubr.msk.bf16.vlgmr.msra.gmra.mrb[0].mxu0 %vm377_vm3, %v4159_v34 }
  0xa3   : > { %3421 = vmatpush3.bf16.msra.mxu0 %v1105_v47  ;;  %3408 = vmatprep.mubr.msk.bf16.mxu0 %vm377_vm3, %v4198_v27 }
  0xa4   : > { %3438 = vmatprep.subr.bf16.mxu0 %v1227_v46 }
  0xa5   : > { %3567 = vmatmul.mubr.msk.bf16.vlgmr.msra.gmra.mrb[0].mxu1 %vm377_vm3, %v4168_v45 }
  0xa6   : > { %3583 = vmatpush3.bf16.msra.mxu1 %v1105_v47  ;;  %3570 = vmatprep.mubr.msk.bf16.mxu1 %vm377_vm3, %v4224_v21 }
  0xa7   : > { %3600 = vmatprep.subr.bf16.mxu1 %v1227_v46 }
  0xaa   : > { %3409 = vmatmul.mubr.msk.bf16.gmra.mrb[4].mxu0 %vm377_vm3, %v4233_v35 }
  0xab   : > { %3412 = vmatprep.mubr.msk.bf16.mxu0 %vm377_vm3, %v4288_v3 }
  0xad   : > { %3571 = vmatmul.mubr.msk.bf16.gmra.mrb[4].mxu1 %vm377_vm3, %v4263_v62 }
  0xae   : > { %3574 = vmatprep.mubr.msk.bf16.mxu1 %vm377_vm3, %v4971_v36 }
  0xb2   : > { %3413 = vmatmul.mubr.msk.bf16.gmra.mrb[8].mxu0 %vm377_vm3, %v4972_v37 }
  0xb3   : > { %3416 = vmatprep.mubr.msk.bf16.mxu0 %vm377_vm3, %v4354_v30 }
  0xb5   : > { %3575 = vmatmul.mubr.msk.bf16.gmra.mrb[8].mxu1 %vm377_vm3, %v4339_v38 }
  0xb6   : > { %3578 = vmatprep.mubr.msk.bf16.mxu1 %vm377_vm3, %v4368_v19 }
  0xba   : > { %3417 = vmatmul.mubr.msk.bf16.gmra.mrb[12].mxu0 %vm377_vm3, %v4973_v22 }
  0xbb   : > { %3422 = vmatprep.mubr.msk.bf16.mxu0 %vm377_vm3, %v4403_v41  ;;  %v2388_v41 = vrot.slane %v270_v53, 2 }
  0xbd   : > { %3579 = vmatmul.mubr.msk.bf16.gmra.mrb[12].mxu1 %vm377_vm3, %v4675_v50  ;;  %v2390_v58 = vsel %vm630_vm4, %v2388_v41, %v2389_v2 }
  0xbe   : > { %3584 = vmatprep.mubr.msk.bf16.mxu1 %vm377_vm3, %v4405_v14  ;;  %v4715_v47 = vpack.c.bf16 %v2392_v40, %v2390_v58 }
  0xc2   : > { %3423 = vmatmul.mubr.msk.bf16.vlgmr.msra.gmra.mrb[0].mxu0 %vm377_vm3, %v4434_v42 }
  0xc3   : > { %3439 = vmatpush3.bf16.msra.mxu0 %v1227_v46  ;;  %3426 = vmatprep.mubr.msk.bf16.mxu0 %vm377_vm3, %v4449_v23 }
  0xc4   : > { %3456 = vmatprep.subr.bf16.mxu0 %v1359_v56 }
  0xc5   : > { %3585 = vmatmul.mubr.msk.bf16.vlgmr.msra.gmra.mrb[0].mxu1 %vm377_vm3, %v4441_v8 }
  0xc6   : > { %3601 = vmatpush3.bf16.msra.mxu1 %v1227_v46  ;;  %3588 = vmatprep.mubr.msk.bf16.mxu1 %vm377_vm3, %v4467_v28  ;;  %v1488_v46 = vand.u32 %v3076_v43, %v4000_v4  ;;  %v219_v4 = vld [vmem:[%s4012_s21 + $0xcc] sm:$0xff]  }
  0xc7   : > { %3618 = vmatprep.subr.bf16.mxu1 %v1359_v56 }
  0xca   : > { %3427 = vmatmul.mubr.msk.bf16.gmra.mrb[4].mxu0 %vm377_vm3, %v4480_v55 }
  0xcb   : > { %3430 = vmatprep.mubr.msk.bf16.mxu0 %vm377_vm3, %v4497_v20 }
  0xcd   : > { %3589 = vmatmul.mubr.msk.bf16.gmra.mrb[4].mxu1 %vm377_vm3, %v4489_v48 }
  0xce   : > { %3592 = vmatprep.mubr.msk.bf16.mxu1 %vm377_vm3, %v4503_v39 }
  0xd2   : > { %3431 = vmatmul.mubr.msk.bf16.gmra.mrb[8].mxu0 %vm377_vm3, %v4581_v60 }
  0xd3   : > { %3434 = vmatprep.mubr.msk.bf16.mxu0 %vm377_vm3, %v4521_v61 }
  0xd5   : > { %3593 = vmatmul.mubr.msk.bf16.gmra.mrb[8].mxu1 %vm377_vm3, %v4587_v12 }
  0xd6   : > { %3596 = vmatprep.mubr.msk.bf16.mxu1 %vm377_vm3, %v4529_v24 }
  0xda   : > { %3435 = vmatmul.mubr.msk.bf16.gmra.mrb[12].mxu0 %vm377_vm3, %v4407_v57 }
  0xdb   : > { %3440 = vmatprep.mubr.msk.bf16.mxu0 %vm377_vm3, %v4083_v49 }
  0xdd   : > { %3597 = vmatmul.mubr.msk.bf16.gmra.mrb[12].mxu1 %vm377_vm3, %v4715_v47 }
  0xde   : > { %3602 = vmatprep.mubr.msk.bf16.mxu1 %vm377_vm3, %v4089_v51 }
  0xe2   : > { %3441 = vmatmul.mubr.msk.bf16.vlgmr.msra.gmra.mrb[0].mxu0 %vm377_vm3, %v4117_v0 }
  0xe3   : > { %3457 = vmatpush3.bf16.msra.mxu0 %v1359_v56  ;;  %3444 = vmatprep.mubr.msk.bf16.mxu0 %vm377_vm3, %v4156_v33 }
  0xe4   : > { %3474 = vmatprep.subr.bf16.mxu0 %v1488_v46 }
  0xe5   : > { %3603 = vmatmul.mubr.msk.bf16.vlgmr.msra.gmra.mrb[0].mxu1 %vm377_vm3, %v4144_v25 }
  0xe6   : > { %3619 = vmatpush3.bf16.msra.mxu1 %v1359_v56  ;;  %3606 = vmatprep.mubr.msk.bf16.mxu1 %vm377_vm3, %v4183_v11 }
  0xe7   : > { %3636 = vmatprep.subr.bf16.mxu1 %v1488_v46 }
  0xea   : > { %3445 = vmatmul.mubr.msk.bf16.gmra.mrb[4].mxu0 %vm377_vm3, %v4196_v26 }
  0xeb   : > { %3448 = vmatprep.mubr.msk.bf16.mxu0 %vm377_vm3, %v4248_v6 }
  0xed   : > { %3607 = vmatmul.mubr.msk.bf16.gmra.mrb[4].mxu1 %vm377_vm3, %v4222_v29 }
  0xee   : > { %3610 = vmatprep.mubr.msk.bf16.mxu1 %vm377_vm3, %v4261_v63 }
  0xf2   : > { %3449 = vmatmul.mubr.msk.bf16.gmra.mrb[8].mxu0 %vm377_vm3, %v4286_v17  ;;  %v273_v17 = vunpack.c.l.bf16 %v219_v4 }
  0xf3   : > { %3452 = vmatprep.mubr.msk.bf16.mxu0 %vm377_vm3, %v4020_v9  ;;  %v221_v9 = vld [vmem:[%s4012_s21 + $0xd4] sm:$0x1] }
  0xf4   : > { %v275_v49 = vunpack.c.l.bf16 %v221_v9  ;;  %v2632_v51 = vrot.slane %v273_v17, 1 }
  0xf5   : > { %3611 = vmatmul.mubr.msk.bf16.gmra.mrb[8].mxu1 %vm377_vm3, %v4305_v59 }
  0xf6   : > { %3614 = vmatprep.mubr.msk.bf16.mxu1 %vm377_vm3, %v4632_v15  ;;  %v2759_v33 = vrot.slane %v275_v49, 2 }
  0xfa   : > { %3453 = vmatmul.mubr.msk.bf16.gmra.mrb[12].mxu0 %vm377_vm3, %v4052_v31  ;;  %v274_v31 = vunpack.c.h.bf16 %v219_v4 }
  0xfb   : > { %3458 = vmatprep.mubr.msk.bf16.mxu0 %vm377_vm3, %v4159_v34 }
  0xfc   : > { %v2633_v63 = vrot.slane %v274_v31, 1  ;;  %v2757_v29 = vrot.slane %v274_v31, 2 }
  0xfd   : > { %3615 = vmatmul.mubr.msk.bf16.gmra.mrb[12].mxu1 %vm377_vm3, %v219_v4 }
  0xfe   : > { %3620 = vmatprep.mubr.msk.bf16.mxu1 %vm377_vm3, %v4168_v45  ;;  %v2634_v0 = vsel %vm310_vm2, %v2632_v51, %v2633_v63  ;;  %v2760_v45 = vsel %vm630_vm4, %v2757_v29, %v2759_v33 }
 0x102   : > { %3459 = vmatmul.mubr.msk.bf16.vlgmr.msra.gmra.mrb[0].mxu0 %vm377_vm3, %v4198_v27 }
 0x103   : > { %3475 = vmatpush3.bf16.msra.mxu0 %v1488_v46  ;;  %3462 = vmatprep.mubr.msk.bf16.mxu0 %vm377_vm3, %v4233_v35 }
 0x105   : > { %3621 = vmatmul.mubr.msk.bf16.vlgmr.msra.gmra.mrb[0].mxu1 %vm377_vm3, %v4224_v21  ;;  %v4827_v21 = vld [vmem:[%s4871_s2] ss:$0 sm:$0xff] }
 0x106   : > { %3637 = vmatpush3.bf16.msra.mxu1 %v1488_v46  ;;  %3624 = vmatprep.mubr.msk.bf16.mxu1 %vm377_vm3, %v4263_v62  ;;  %v2635_v62 = vrot.slane %v275_v49, 1 }
 0x10a   : > { %3463 = vmatmul.mubr.msk.bf16.gmra.mrb[4].mxu0 %vm377_vm3, %v4288_v3  ;;  %v2636_v3 = vsel %vm310_vm2, %v2633_v63, %v2635_v62 }
 0x10b   : > { %3466 = vmatprep.mubr.msk.bf16.mxu0 %vm377_vm3, %v4972_v37  ;;  %v2639_v25 = vpack.c.bf16 %v2636_v3, %v2634_v0 }
 0x10d   : > { %3625 = vmatmul.mubr.msk.bf16.gmra.mrb[4].mxu1 %vm377_vm3, %v4971_v36 }
 0x10e   : > { %3628 = vmatprep.mubr.msk.bf16.mxu1 %vm377_vm3, %v4339_v38 }
 0x112   : > { %3467 = vmatmul.mubr.msk.bf16.gmra.mrb[8].mxu0 %vm377_vm3, %v4354_v30 }
 0x113   : > { %3470 = vmatprep.mubr.msk.bf16.mxu0 %vm377_vm3, %v4973_v22 }
 0x115   : > { %3629 = vmatmul.mubr.msk.bf16.gmra.mrb[8].mxu1 %vm377_vm3, %v4368_v19 }
 0x116   : > { %3632 = vmatprep.mubr.msk.bf16.mxu1 %vm377_vm3, %v4675_v50 }
 0x11a   : > { %3471 = vmatmul.mubr.msk.bf16.gmra.mrb[12].mxu0 %vm377_vm3, %v4127_v10  ;;  %v2756_v10 = vrot.slane %v273_v17, 2 }
 0x11b   : > { %3476 = vmatprep.mubr.msk.bf16.mxu0 %vm377_vm3, %v4434_v42 }
 0x11c   : > { %v2758_v34 = vsel %vm630_vm4, %v2756_v10, %v2757_v29 }
 0x11d   : > { %3633 = vmatmul.mubr.msk.bf16.gmra.mrb[12].mxu1 %vm377_vm3, %v2639_v25  ;;  %v2763_v11 = vpack.c.bf16 %v2760_v45, %v2758_v34 }
 0x11e   : > { %3638 = vmatprep.mubr.msk.bf16.mxu1 %vm377_vm3, %v4441_v8 }
 0x122   : > { %3477 = vmatmul.mubr.msk.bf16.vlgmr.msra.gmra.mrb[0].mxu0 %vm377_vm3, %v4449_v23 }
 0x123   : > { %3480 = vmatprep.mubr.msk.bf16.mxu0 %vm377_vm3, %v4480_v55 }
 0x125   : > { %3639 = vmatmul.mubr.msk.bf16.vlgmr.msra.gmra.mrb[0].mxu1 %vm377_vm3, %v4467_v28 }
 0x126   : > { %3642 = vmatprep.mubr.msk.bf16.mxu1 %vm377_vm3, %v4489_v48 }
 0x12a   : > { %3481 = vmatmul.mubr.msk.bf16.gmra.mrb[4].mxu0 %vm377_vm3, %v4497_v20 }
 0x12b   : > { %3484 = vmatprep.mubr.msk.bf16.mxu0 %vm377_vm3, %v4581_v60 }
 0x12d   : > { %3643 = vmatmul.mubr.msk.bf16.gmra.mrb[4].mxu1 %vm377_vm3, %v4503_v39 }
 0x12e   : > { %3646 = vmatprep.mubr.msk.bf16.mxu1 %vm377_vm3, %v4587_v12 }
 0x132   : > { %3485 = vmatmul.mubr.msk.bf16.gmra.mrb[8].mxu0 %vm377_vm3, %v4521_v61 }
 0x133   : > { %3488 = vmatprep.mubr.msk.bf16.mxu0 %vm377_vm3, %v4407_v57 }
 0x135   : > { %3647 = vmatmul.mubr.msk.bf16.gmra.mrb[8].mxu1 %vm377_vm3, %v4529_v24 }
 0x136   : > { %3650 = vmatprep.mubr.msk.bf16.mxu1 %vm377_vm3, %v4715_v47 }
 0x13a   : > { %3489 = vmatmul.mubr.msk.bf16.gmra.mrb[12].mxu0 %vm377_vm3, %v4405_v14 }
 0x13d   : > { %3651 = vmatmul.mubr.msk.bf16.gmra.mrb[12].mxu1 %vm377_vm3, %v2763_v11 }
 0x1f5   : > { %v3478_v26 = vpop.f32.mrb[0].mxu0 }
 0x1f6   : > { %v1524_v27 = vpop.f32.mrb[1].mxu0  ;;  %v1611_v30 = vadd.f32 %v3478_v26, %v4827_v21 }
 0x1f7   : > { %v1609_v35 = vadd.f32 %v4827_v21, %v1524_v27  ;;  %v3479_v6 = vpop.f32.mrb[2].mxu0 }
 0x1f8   : > { %v3640_v59 = vpop.f32.mrb[0].mxu1  ;;  %v1527_v38 = vpop.f32.mrb[3].mxu0  ;;  %v1612_v23 = vadd.f32 %v3479_v6, %v4827_v21  ;;  %v1627_v39 = vmax.f32 %v1611_v30, 0.0 }
 0x1f9   : > { %v2801_v19 = vpop.f32.mrb[1].mxu1  ;;  %v1610_v57 = vadd.f32 %v4827_v21, %v1527_v38  ;;  %v1625_v8 = vmax.f32 %v1609_v35, 0.0  ;;  %v2882_v48 = vadd.f32 %v3640_v59, %v4827_v21 }
 0x1fa   : > { %v2880_v14 = vadd.f32 %v4827_v21, %v2801_v19  ;;  %v3641_v42 = vpop.f32.mrb[2].mxu1  ;;  %v1628_v53 = vmax.f32 %v1612_v23, 0.0 }
 0x1fb   : > { %v1626_v28 = vmax.f32 %v1610_v57, 0.0  ;;  %v2804_v55 = vpop.f32.mrb[3].mxu1  ;;  %v2883_v12 = vadd.f32 %v3641_v42, %v4827_v21  ;;  %v2898_v5 = vmax.f32 %v2882_v48, 0.0 }
 0x1fc   : > { %v2881_v20 = vadd.f32 %v4827_v21, %v2804_v55  ;;  %v2896_v60 = vmax.f32 %v2880_v14, 0.0 }
 0x1fd   : > { %v1641_v61 = vadd.f32 %v1626_v28, %v1625_v8  ;;  %v3482_v24 = vpop.f32.mrb[4].mxu0  ;;  %v2899_v56 = vmax.f32 %v2883_v12, 0.0 }
 0x1fe   : > { %v2897_v15 = vmax.f32 %v2881_v20, 0.0  ;;  %v1540_v54 = vpop.f32.mrb[5].mxu0  ;;  %v1615_v52 = vadd.f32 %v3482_v24, %v4827_v21 }
 0x1ff   : > { %v1642_v1 = vadd.f32 %v1641_v61, %v1627_v39  ;;  %v1613_v36 = vadd.f32 %v4827_v21, %v1540_v54  ;;  %v3483_v7 = vpop.f32.mrb[6].mxu0 }
 0x200   : > { %v2912_v16 = vadd.f32 %v2897_v15, %v2896_v60  ;;  %v3644_v37 = vpop.f32.mrb[4].mxu1  ;;  %v1543_v44 = vpop.f32.mrb[7].mxu0  ;;  %v1616_v40 = vadd.f32 %v3483_v7, %v4827_v21  ;;  %v1631_v31 = vmax.f32 %v1615_v52, 0.0 }
 0x201   : > { %v1629_v13 = vmax.f32 %v1613_v36, 0.0  ;;  %v1643_v50 = vadd.f32 %v1642_v1, %v1628_v53  ;;  %v2817_v22 = vpop.f32.mrb[5].mxu1  ;;  %v1614_v32 = vadd.f32 %v4827_v21, %v1543_v44  ;;  %v2886_v46 = vadd.f32 %v3644_v37, %v4827_v21 }
 0x202   : > { %v2913_v41 = vadd.f32 %v2912_v16, %v2898_v5  ;;  %v2884_v2 = vadd.f32 %v4827_v21, %v2817_v22  ;;  %v3645_v18 = vpop.f32.mrb[6].mxu1  ;;  %v1632_v25 = vmax.f32 %v1616_v40, 0.0 }
 0x203   : > { %v1644_v58 = vadd.f32 %v1643_v50, %v1629_v13  ;;  %v1630_v47 = vmax.f32 %v1614_v32, 0.0  ;;  %v2820_v43 = vpop.f32.mrb[7].mxu1  ;;  %v2887_v62 = vadd.f32 %v3645_v18, %v4827_v21  ;;  %v2902_v34 = vmax.f32 %v2886_v46, 0.0 }
 0x204   : > { %v2900_v4 = vmax.f32 %v2884_v2, 0.0  ;;  %v2914_v9 = vadd.f32 %v2913_v41, %v2899_v56  ;;  %v2885_v17 = vadd.f32 %v4827_v21, %v2820_v43 }
 0x205   : > { %v1645_v49 = vadd.f32 %v1644_v58, %v1630_v47  ;;  %v3486_v51 = vpop.f32.mrb[8].mxu0  ;;  %v2903_v30 = vmax.f32 %v2887_v62, 0.0 }
 0x206   : > { %v2915_v63 = vadd.f32 %v2914_v9, %v2900_v4  ;;  %v2901_v0 = vmax.f32 %v2885_v17, 0.0  ;;  %v1556_v3 = vpop.f32.mrb[9].mxu0  ;;  %v1619_v27 = vadd.f32 %v3486_v51, %v4827_v21 }
 0x207   : > { %v1646_v10 = vadd.f32 %v1645_v49, %v1631_v31  ;;  %v1617_v29 = vadd.f32 %v4827_v21, %v1556_v3  ;;  %v3487_v33 = vpop.f32.mrb[10].mxu0 }
 0x208   : > { %v2916_v45 = vadd.f32 %v2915_v63, %v2901_v0  ;;  %v3648_v11 = vpop.f32.mrb[8].mxu1  ;;  %v1559_v26 = vpop.f32.mrb[11].mxu0  ;;  %v1620_v8 = vadd.f32 %v3487_v33, %v4827_v21  ;;  %v1635_v61 = vmax.f32 %v1619_v27, 0.0 }
 0x209   : > { %v1633_v35 = vmax.f32 %v1617_v29, 0.0  ;;  %v1647_v6 = vadd.f32 %v1646_v10, %v1632_v25  ;;  %v2833_v59 = vpop.f32.mrb[9].mxu1  ;;  %v1618_v38 = vadd.f32 %v4827_v21, %v1559_v26  ;;  %v2890_v55 = vadd.f32 %v3648_v11, %v4827_v21 }
 0x20a   : > { %v2917_v19 = vadd.f32 %v2916_v45, %v2902_v34  ;;  %v2888_v57 = vadd.f32 %v4827_v21, %v2833_v59  ;;  %v3649_v14 = vpop.f32.mrb[10].mxu1  ;;  %v1636_v1 = vmax.f32 %v1620_v8, 0.0 }
 0x20b   : > { %v1648_v42 = vadd.f32 %v1647_v6, %v1633_v35  ;;  %v1634_v23 = vmax.f32 %v1618_v38, 0.0  ;;  %v2836_v28 = vpop.f32.mrb[11].mxu1  ;;  %v2891_v15 = vadd.f32 %v3649_v14, %v4827_v21  ;;  %v2906_v16 = vmax.f32 %v2890_v55, 0.0 }
 0x20c   : > { %v2904_v48 = vmax.f32 %v2888_v57, 0.0  ;;  %v2918_v20 = vadd.f32 %v2917_v19, %v2903_v30  ;;  %v2889_v39 = vadd.f32 %v4827_v21, %v2836_v28  ;;  %v2939_v28 = vld [vmem:[%s166_s15] sm:$0x1] }
 0x20d   : > { %v1649_v24 = vadd.f32 %v1648_v42, %v1634_v23  ;;  %v3490_v60 = vpop.f32.mrb[12].mxu0  ;;  %v2907_v41 = vmax.f32 %v2891_v15, 0.0 }
 0x20e   : > { %v2919_v12 = vadd.f32 %v2918_v20, %v2904_v48  ;;  %v2905_v54 = vmax.f32 %v2889_v39, 0.0  ;;  %v1572_v53 = vpop.f32.mrb[13].mxu0  ;;  %v1623_v13 = vadd.f32 %v3490_v60, %v4827_v21 }
 0x20f   : > { %v1650_v36 = vadd.f32 %v1649_v24, %v1635_v61  ;;  %v1621_v7 = vadd.f32 %v4827_v21, %v1572_v53  ;;  %v3491_v5 = vpop.f32.mrb[14].mxu0 }
 0x210   : > { %v2920_v37 = vadd.f32 %v2919_v12, %v2905_v54  ;;  %v3652_v44 = vpop.f32.mrb[12].mxu1  ;;  %v1575_v52 = vpop.f32.mrb[15].mxu0  ;;  %v1624_v47 = vadd.f32 %v3491_v5, %v4827_v21  ;;  %v1639_v49 = vmax.f32 %v1623_v13, 0.0 }
 0x211   : > { %v1637_v50 = vmax.f32 %v1621_v7, 0.0  ;;  %v1651_v22 = vadd.f32 %v1650_v36, %v1636_v1  ;;  %v2849_v32 = vpop.f32.mrb[13].mxu1  ;;  %v1622_v56 = vadd.f32 %v4827_v21, %v1575_v52  ;;  %v2894_v4 = vadd.f32 %v3652_v44, %v4827_v21 }
 0x212   : > { %v2921_v2 = vadd.f32 %v2920_v37, %v2906_v16  ;;  %v2892_v18 = vadd.f32 %v4827_v21, %v2849_v32  ;;  %v3653_v58 = vpop.f32.mrb[14].mxu1  ;;  %v1640_v3 = vmax.f32 %v1624_v47, 0.0 }
 0x213   : > { %v1652_v40 = vadd.f32 %v1651_v22, %v1637_v50  ;;  %v1638_v43 = vmax.f32 %v1622_v56, 0.0  ;;  %v2852_v46 = vpop.f32.mrb[15].mxu1  ;;  %v2895_v62 = vadd.f32 %v3653_v58, %v4827_v21  ;;  %v2910_v10 = vmax.f32 %v2894_v4, 0.0 }
 0x214   : > { %v2908_v9 = vmax.f32 %v2892_v18, 0.0  ;;  %v2922_v17 = vadd.f32 %v2921_v2, %v2907_v41  ;;  %v2893_v31 = vadd.f32 %v4827_v21, %v2852_v46 }
 0x215   : > { %v1653_v51 = vadd.f32 %v1652_v40, %v1638_v43  ;;  %v2911_v34 = vmax.f32 %v2895_v62, 0.0 }
 0x216   : > { %v2923_v63 = vadd.f32 %v2922_v17, %v2908_v9  ;;  %v2909_v0 = vmax.f32 %v2893_v31, 0.0 }
 0x217   : > { %v1654_v25 = vadd.f32 %v1653_v51, %v1639_v49 }
 0x218   : > { %v2924_v29 = vadd.f32 %v2923_v63, %v2909_v0 }
 0x219   : > { %v1655_v33 = vadd.f32 %v1654_v25, %v1640_v3 }
 0x21a   : > { %v2925_v45 = vadd.f32 %v2924_v29, %v2910_v10 }
 0x21b   : > { %v1656_v11 = vrot.slane %v1655_v33, 4 }
 0x21c   : > { %v2926_v26 = vadd.f32 %v2925_v45, %v2911_v34 }
 0x21d   : > { %v1657_v27 = vadd.f32 %v1656_v11, %v1655_v33 }
 0x21e   : > { %v2927_v35 = vrot.slane %v2926_v26, 4 }
 0x21f   : > { %v1658_v6 = vrot.slane %v1657_v27, 2 }
 0x220   : > { %v2928_v59 = vadd.f32 %v2927_v35, %v2926_v26 }
 0x221   : > { %v1659_v38 = vadd.f32 %v1658_v6, %v1657_v27 }
 0x222   : > { %v2929_v30 = vrot.slane %v2928_v59, 2 }
 0x223   : > { %v1660_v19 = vrot.slane %v1659_v38, 1 }
 0x224   : > { %v2930_v57 = vadd.f32 %v2929_v30, %v2928_v59 }
 0x225   : > { %v1661_v21 = vadd.f32 %v1660_v19, %v1659_v38 }
 0x226   : > { %v2931_v14 = vrot.slane %v2930_v57, 1 }
 0x228   : > { %v2932_v42 = vadd.f32 %v2931_v14, %v2930_v57 }
 0x22a   : > { %v2933_v8 = vadd.f32 %v2932_v42, %v1661_v21 }
 0x22c   : > { %v2934_v23 = vmul.f32 0.00390625, %v2933_v8 }
 0x22e   : > { %v2935_v55 = vpack.c.bf16 %v2934_v23, %v2934_v23 }
 0x230   : > { %v2940_v48 = vsel %vm2938_vm6, %v2935_v55, %v2939_v28 }
 0x231   : > { %2941 = vst [vmem:[%s166_s15] sm:$0x1] %v2940_v48 }
 0x232 PF: > { %s13_s12 = sadd.s32 1, %s3962_s12  }
 0x233   : > { %p10_p4 = scmp.ge.s32.totalorder %s13_s12, 4  }
 0x235   :  { %12 = sbr.rel (!%p10_p4) target bundleno = 1 (0x1), region = 70 }

</bundles_post_ra>
